<compile_context>
chip_gen: v7x
topology: tpu7x:2x2x1
jax: 0.10.0
libtpu: 0.0.40
codegen_flags: <defaults>
</compile_context>

<pallas_src>
import math

import jax
import jax.numpy as jnp
from jax.experimental import pallas as pl
from jax.experimental.pallas import tpu as pltpu

DTYPE = jnp.float32  # config.dtype for this small synthetic config
EPS = 1e-12


# ----------------------------- in-kernel helpers -----------------------------

def _erf(x):
    # Abramowitz & Stegun 7.1.26 polynomial (max abs err ~1.5e-7);
    # uses only exp/abs/where, all Mosaic-supported.
    a1, a2, a3, a4, a5 = 0.254829592, -0.284496736, 1.421413741, -1.453152027, 1.061405429
    p = 0.3275911
    s = jnp.where(x >= 0.0, 1.0, -1.0)
    ax = jnp.abs(x)
    t = 1.0 / (1.0 + p * ax)
    poly = ((((a5 * t + a4) * t + a3) * t + a2) * t + a1) * t
    return s * (1.0 - poly * jnp.exp(-ax * ax))


def _gelu(x):
    # exact (erf-based) GELU, matching relax.op.nn.gelu
    return 0.5 * x * (1.0 + _erf(x * 0.7071067811865476))


def _layer_norm(x, w, b):
    mean = jnp.mean(x, axis=-1, keepdims=True)
    var = jnp.mean(jnp.square(x - mean), axis=-1, keepdims=True)
    return (x - mean) * jax.lax.rsqrt(var + EPS) * w + b


def _softmax_rows(s):
    s = s - jnp.max(s, axis=-1, keepdims=True)
    e = jnp.exp(s)
    # EUP approximate reciprocal for the denominator (free slot).
    return e * pl.reciprocal(jnp.sum(e, axis=-1, keepdims=True), approx=True)


def _attn_core(residual, q, k, v, w_dense, dense_b, norm_w, norm_b,
               num_heads, head_size):
    # q is already scaled by 1/sqrt(head_size) (baked into the packed weights).
    # concat_h(ctx_h) @ W_dense^T == sum_h ctx_h @ (W_dense^T)[h*Hd:(h+1)*Hd, :]
    acc = residual + dense_b                                        # (Sq, D)
    for h in range(num_heads):                                      # static unroll
        lo = h * head_size
        qh = q[:, lo:lo + head_size]
        kh = k[:, lo:lo + head_size]
        vh = v[:, lo:lo + head_size]
        s = jax.lax.dot_general(qh, kh, (((1,), (1,)), ((), ())),
                                preferred_element_type=jnp.float32)  # (Sq, Skv)
        p = _softmax_rows(s)
        ctx_h = jnp.dot(p, vh, preferred_element_type=jnp.float32)   # (Sq, Hd)
        acc = acc + jnp.dot(ctx_h, w_dense[lo:lo + head_size, :],
                            preferred_element_type=jnp.float32)
    return _layer_norm(acc, norm_w, norm_b)


# -------------------------- single fused model kernel -------------------------

def _make_qformer_kernel(num_heads, head_size, num_layers, has_cross, word_embed):
    D = word_embed

    def kernel(*refs):
        out_ref = refs[-1]
        ins = refs[:-1]
        pos = [0]

        def nxt():
            r = ins[pos[0]]
            pos[0] += 1
            return r[...].astype(jnp.float32)

        qt = nxt()                                     # (Sq, D) query tokens
        enc = nxt()                                    # (N, E) visual features
        embn = nxt()                                   # (2, D) [ln_w, ln_b]
        emb = _layer_norm(qt, embn[0:1, :], embn[1:2, :])

        for l in range(num_layers):                    # static unroll over layers
            # ---- self attention (packed QKV projection) ----
            w_qkv = nxt()                              # (D, 3D), q-columns pre-scaled
            b_qkv = nxt()                              # (1, 3D)
            w_d = nxt()                                # (D, D) pre-transposed dense
            aux = nxt()                                # (3, D): dense_b, ln_w, ln_b
            qkv = jnp.dot(emb, w_qkv, preferred_element_type=jnp.float32) + b_qkv
            emb = _attn_core(emb,
                             qkv[:, 0:D], qkv[:, D:2 * D], qkv[:, 2 * D:3 * D],
                             w_d, aux[0:1, :], aux[1:2, :], aux[2:3, :],
                             num_heads, head_size)

            # ---- cross attention over visual tokens (even layers) ----
            if has_cross[l]:
                w_q = nxt()                            # (D, D), pre-scaled
                w_kv = nxt()                           # (E, 2D)
                b_kv = nxt()                           # (1, 2D)
                w_d = nxt()                            # (D, D)
                aux = nxt()                            # (4, D): q_b, dense_b, ln_w, ln_b
                q = jnp.dot(emb, w_q, preferred_element_type=jnp.float32) + aux[0:1, :]
                kv = jnp.dot(enc, w_kv, preferred_element_type=jnp.float32) + b_kv
                emb = _attn_core(emb, q, kv[:, 0:D], kv[:, D:2 * D],
                                 w_d, aux[1:2, :], aux[2:3, :], aux[3:4, :],
                                 num_heads, head_size)

            # ---- feed-forward (GELU MLP) ----
            w_in = nxt()                               # (D, I)
            b_in = nxt()                               # (1, I)
            w_out = nxt()                              # (I, D)
            aux = nxt()                                # (3, D): out_b, ln_w, ln_b
            h = _gelu(jnp.dot(emb, w_in, preferred_element_type=jnp.float32) + b_in)
            y = jnp.dot(h, w_out, preferred_element_type=jnp.float32) + aux[0:1, :] + emb
            emb = _layer_norm(y, aux[1:2, :], aux[2:3, :])

        out_ref[...] = emb.astype(out_ref.dtype)

    return kernel


# ------------------------------ parameter init --------------------------------

def _init(key, shape, scale=0.02):
    return (scale * jax.random.normal(key, shape, jnp.float32)).astype(DTYPE)


def init_attention_params(key, word_embed, kv_in_dim):
    ks = jax.random.split(key, 10)
    D = word_embed
    return {
        "query_weight": _init(ks[0], (D, D)),          # torch layout (out, in)
        "query_bias": _init(ks[1], (1, D)),
        "key_weight": _init(ks[2], (D, kv_in_dim)),
        "key_bias": _init(ks[3], (1, D)),
        "value_weight": _init(ks[4], (D, kv_in_dim)),
        "value_bias": _init(ks[5], (1, D)),
        "dense_weight": _init(ks[6], (D, D)),
        "dense_bias": _init(ks[7], (1, D)),
        "norm_weight": 1.0 + _init(ks[8], (1, D)),
        "norm_bias": _init(ks[9], (1, D)),
    }


def init_qformer_params(key, cfg):
    D = cfg["word_embed"]
    Sq = cfg["num_query_token"]
    E = cfg["visual_encoder_embed_dim"]
    I = cfg["bert_interm_query"]
    L = cfg["bert_hidden_layers"]
    keys = jax.random.split(key, 3 + L)
    params = {
        "query_tokens": _init(keys[0], (1, Sq, D)),
        "emb_norm_weight": 1.0 + _init(keys[1], (1, D)),
        "emb_norm_bias": _init(keys[2], (1, D)),
        "layers": [],
    }
    for i in range(L):
        lk = jax.random.split(keys[3 + i], 8)
        layer = {
            "attention": init_attention_params(lk[0], D, D),
            # cross-attention on even layers, keyed on the visual encoder dim
            "cross_attention": (init_attention_params(lk[1], D, E)
                                if i % 2 == 0 else None),
            "interm_query_weight": _init(lk[2], (I, D)),
            "interm_query_bias": _init(lk[3], (1, I)),
            "output_query_weight": _init(lk[4], (D, I)),
            "output_query_bias": _init(lk[5], (1, D)),
            "norm_weight": 1.0 + _init(lk[6], (1, D)),
            "norm_bias": _init(lk[7], (1, D)),
        }
        params["layers"].append(layer)
    return params


# ----------------------- host-side packing / pre-transpose --------------------

def pack_qformer_params(params, cfg):
    """One-time: transpose weights to (in, out), bake 1/sqrt(Hd) into q,
    and pack qkv / bias / layernorm vectors into a few larger arrays."""
    Hd = cfg["bert_attn_head_size"]
    inv_scale = 1.0 / math.sqrt(Hd)
    has_cross = tuple(lp["cross_attention"] is not None for lp in params["layers"])

    layer_arrays = []
    for lp in params["layers"]:
        ap = lp["attention"]
        w_qkv = jnp.concatenate([ap["query_weight"].T * inv_scale,
                                 ap["key_weight"].T,
                                 ap["value_weight"].T], axis=1)            # (D, 3D)
        b_qkv = jnp.concatenate([ap["query_bias"] * inv_scale,
                                 ap["key_bias"], ap["value_bias"]], axis=1)  # (1, 3D)
        aux = jnp.concatenate([ap["dense_bias"], ap["norm_weight"],
                               ap["norm_bias"]], axis=0)                   # (3, D)
        layer_arrays += [w_qkv, b_qkv, ap["dense_weight"].T, aux]

        cp = lp["cross_attention"]
        if cp is not None:
            w_q = cp["query_weight"].T * inv_scale                          # (D, D)
            w_kv = jnp.concatenate([cp["key_weight"].T,
                                    cp["value_weight"].T], axis=1)          # (E, 2D)
            b_kv = jnp.concatenate([cp["key_bias"], cp["value_bias"]], axis=1)  # (1, 2D)
            aux = jnp.concatenate([cp["query_bias"] * inv_scale, cp["dense_bias"],
                                   cp["norm_weight"], cp["norm_bias"]], axis=0)  # (4, D)
            layer_arrays += [w_q, w_kv, b_kv, cp["dense_weight"].T, aux]

        aux = jnp.concatenate([lp["output_query_bias"], lp["norm_weight"],
                               lp["norm_bias"]], axis=0)                   # (3, D)
        layer_arrays += [lp["interm_query_weight"].T, lp["interm_query_bias"],
                         lp["output_query_weight"].T, aux]

    return {
        "query_tokens": params["query_tokens"][0],                         # (Sq, D)
        "emb_norm": jnp.concatenate([params["emb_norm_weight"],
                                     params["emb_norm_bias"]], axis=0),    # (2, D)
        "layer_arrays": layer_arrays,
        "has_cross": has_cross,
    }


# --------------------------------- forward ------------------------------------

def minigpt_qformer_forward(packed, image_embeds, cfg):
    """image_embeds: (1, N, E) -> returns (1, num_query_token, word_embed)."""
    Sq = cfg["num_query_token"]
    D = cfg["word_embed"]
    enc = image_embeds[0]                                                  # (N, E)

    # NOTE: the reference builds extend_attention_mask = (1 - ones)*(-10000) and
    # encoder_extend_attention_mask = (1 - ones); both are identically zero for
    # this config, so the additive mask is dropped from the kernel entirely.

    args = [packed["query_tokens"], enc, packed["emb_norm"]] + list(packed["layer_arrays"])
    kernel = _make_qformer_kernel(cfg["bert_num_attn_heads"],
                                  cfg["bert_attn_head_size"],
                                  cfg["bert_hidden_layers"],
                                  packed["has_cross"], D)

    out = pl.pallas_call(
        kernel,
        out_shape=jax.ShapeDtypeStruct((Sq, D), DTYPE),
        in_specs=[pl.BlockSpec(memory_space=pltpu.MemorySpace.VMEM)
                  for _ in range(len(args))],
        out_specs=pl.BlockSpec(memory_space=pltpu.MemorySpace.VMEM),
    )(*args)
    return out[None]                                                       # (1, Sq, D)


# ----------------------------------- main --------------------------------------

if __name__ == "__main__":
    # Small synthetic config consistent with MiniGPTConfig structure
    # (num_attn_heads * attn_head_size == word_embed).
    cfg = {
        "word_embed": 64,
        "num_query_token": 8,
        "bert_num_attn_heads": 2,
        "bert_attn_head_size": 32,
        "visual_encoder_embed_dim": 128,
        "visual_encoder_attn_hidden_dim": 16,   # N visual tokens
        "bert_interm_query": 128,
        "bert_hidden_layers": 2,                # layer 0 has cross-attention
    }

    key = jax.random.PRNGKey(0)
    kp, kx = jax.random.split(key)
    params = init_qformer_params(kp, cfg)
    packed = pack_qformer_params(params, cfg)
    image_embeds = jax.random.normal(
        kx,
        (1, cfg["visual_encoder_attn_hidden_dim"], cfg["visual_encoder_embed_dim"]),
        DTYPE)

    out = minigpt_qformer_forward(packed, image_embeds, cfg)
    out = jax.block_until_ready(out)
    assert out.shape == (1, cfg["num_query_token"], cfg["word_embed"])
    assert bool(jnp.all(jnp.isfinite(out)))
    print("KERNEL_OK")
</pallas_src>

<mosaic_0001>
module attributes {stable_mosaic.version = 11 : i64} {
  func.func @kernel(%arg0: memref<8x64xf32, #tpu.memory_space<vmem>>, %arg1: memref<16x128xf32, #tpu.memory_space<vmem>>, %arg2: memref<2x64xf32, #tpu.memory_space<vmem>>, %arg3: memref<64x192xf32, #tpu.memory_space<vmem>>, %arg4: memref<1x192xf32, #tpu.memory_space<vmem>>, %arg5: memref<64x64xf32, #tpu.memory_space<vmem>>, %arg6: memref<3x64xf32, #tpu.memory_space<vmem>>, %arg7: memref<64x64xf32, #tpu.memory_space<vmem>>, %arg8: memref<128x128xf32, #tpu.memory_space<vmem>>, %arg9: memref<1x128xf32, #tpu.memory_space<vmem>>, %arg10: memref<64x64xf32, #tpu.memory_space<vmem>>, %arg11: memref<4x64xf32, #tpu.memory_space<vmem>>, %arg12: memref<64x128xf32, #tpu.memory_space<vmem>>, %arg13: memref<1x128xf32, #tpu.memory_space<vmem>>, %arg14: memref<128x64xf32, #tpu.memory_space<vmem>>, %arg15: memref<3x64xf32, #tpu.memory_space<vmem>>, %arg16: memref<64x192xf32, #tpu.memory_space<vmem>>, %arg17: memref<1x192xf32, #tpu.memory_space<vmem>>, %arg18: memref<64x64xf32, #tpu.memory_space<vmem>>, %arg19: memref<3x64xf32, #tpu.memory_space<vmem>>, %arg20: memref<64x128xf32, #tpu.memory_space<vmem>>, %arg21: memref<1x128xf32, #tpu.memory_space<vmem>>, %arg22: memref<128x64xf32, #tpu.memory_space<vmem>>, %arg23: memref<3x64xf32, #tpu.memory_space<vmem>>, %arg24: memref<8x64xf32, #tpu.memory_space<vmem>>) attributes {dimension_semantics = [], scalar_prefetch = 0 : i64, scratch_operands = 0 : i64, tpu.core_type = #tpu.core_type<tc>} {
    %c0 = arith.constant 0 : index
    %c0_0 = arith.constant 0 : index
    %0 = vector.load %arg0[%c0, %c0_0] : memref<8x64xf32, #tpu.memory_space<vmem>>, vector<8x64xf32>
    %c0_1 = arith.constant 0 : index
    %c0_2 = arith.constant 0 : index
    %1 = vector.load %arg1[%c0_1, %c0_2] : memref<16x128xf32, #tpu.memory_space<vmem>>, vector<16x128xf32>
    %c0_3 = arith.constant 0 : index
    %c0_4 = arith.constant 0 : index
    %2 = vector.load %arg2[%c0_3, %c0_4] : memref<2x64xf32, #tpu.memory_space<vmem>>, vector<2x64xf32>
    %3 = vector.extract_strided_slice %2 {offsets = [0, 0], sizes = [1, 64], strides = [1, 1]} : vector<2x64xf32> to vector<1x64xf32>
    %4 = vector.extract_strided_slice %2 {offsets = [1, 0], sizes = [1, 64], strides = [1, 1]} : vector<2x64xf32> to vector<1x64xf32>
    %cst = arith.constant dense<0.000000e+00> : vector<8xf32>
    %5 = vector.multi_reduction <add>, %0, %cst [1] : vector<8x64xf32> to vector<8xf32>
    %6 = vector.shape_cast %5 : vector<8xf32> to vector<8x1xf32>
    %cst_5 = arith.constant 6.400000e+01 : f32
    %7 = vector.broadcast %cst_5 : f32 to vector<8x1xf32>
    %8 = arith.divf %6, %7 : vector<8x1xf32>
    %9 = vector.broadcast %8 : vector<8x1xf32> to vector<8x64xf32>
    %10 = arith.subf %0, %9 : vector<8x64xf32>
    %11 = arith.mulf %10, %10 : vector<8x64xf32>
    %cst_6 = arith.constant dense<0.000000e+00> : vector<8xf32>
    %12 = vector.multi_reduction <add>, %11, %cst_6 [1] : vector<8x64xf32> to vector<8xf32>
    %13 = vector.shape_cast %12 : vector<8xf32> to vector<8x1xf32>
    %cst_7 = arith.constant 6.400000e+01 : f32
    %14 = vector.broadcast %cst_7 : f32 to vector<8x1xf32>
    %15 = arith.divf %13, %14 : vector<8x1xf32>
    %16 = vector.broadcast %8 : vector<8x1xf32> to vector<8x64xf32>
    %17 = arith.subf %0, %16 : vector<8x64xf32>
    %cst_8 = arith.constant 9.99999996E-13 : f32
    %18 = vector.broadcast %cst_8 : f32 to vector<8x1xf32>
    %19 = arith.addf %15, %18 : vector<8x1xf32>
    %20 = math.rsqrt %19 : vector<8x1xf32>
    %21 = vector.broadcast %20 : vector<8x1xf32> to vector<8x64xf32>
    %22 = arith.mulf %17, %21 : vector<8x64xf32>
    %23 = vector.broadcast %3 : vector<1x64xf32> to vector<8x64xf32>
    %24 = arith.mulf %22, %23 : vector<8x64xf32>
    %25 = vector.broadcast %4 : vector<1x64xf32> to vector<8x64xf32>
    %26 = arith.addf %24, %25 : vector<8x64xf32>
    %c0_9 = arith.constant 0 : index
    %c0_10 = arith.constant 0 : index
    %27 = vector.load %arg3[%c0_9, %c0_10] : memref<64x192xf32, #tpu.memory_space<vmem>>, vector<64x192xf32>
    %c0_11 = arith.constant 0 : index
    %c0_12 = arith.constant 0 : index
    %28 = vector.load %arg4[%c0_11, %c0_12] : memref<1x192xf32, #tpu.memory_space<vmem>>, vector<1x192xf32>
    %c0_13 = arith.constant 0 : index
    %c0_14 = arith.constant 0 : index
    %29 = vector.load %arg5[%c0_13, %c0_14] : memref<64x64xf32, #tpu.memory_space<vmem>>, vector<64x64xf32>
    %c0_15 = arith.constant 0 : index
    %c0_16 = arith.constant 0 : index
    %30 = vector.load %arg6[%c0_15, %c0_16] : memref<3x64xf32, #tpu.memory_space<vmem>>, vector<3x64xf32>
    %cst_17 = arith.constant dense<0.000000e+00> : vector<8x192xf32>
    %31 = tpu.matmul %26, %27, %cst_17 {dimension_numbers = #tpu.dot_dimension_numbers<[1], [0], [0], [1], [0, 0, 1, 1], [], []>} : vector<8x64xf32>, vector<64x192xf32>, vector<8x192xf32> -> vector<8x192xf32>
    %32 = vector.broadcast %28 : vector<1x192xf32> to vector<8x192xf32>
    %33 = arith.addf %31, %32 : vector<8x192xf32>
    %34 = vector.extract_strided_slice %33 {offsets = [0, 0], sizes = [8, 64], strides = [1, 1]} : vector<8x192xf32> to vector<8x64xf32>
    %35 = vector.extract_strided_slice %33 {offsets = [0, 64], sizes = [8, 64], strides = [1, 1]} : vector<8x192xf32> to vector<8x64xf32>
    %36 = vector.extract_strided_slice %33 {offsets = [0, 128], sizes = [8, 64], strides = [1, 1]} : vector<8x192xf32> to vector<8x64xf32>
    %37 = vector.extract_strided_slice %30 {offsets = [0, 0], sizes = [1, 64], strides = [1, 1]} : vector<3x64xf32> to vector<1x64xf32>
    %38 = vector.extract_strided_slice %30 {offsets = [1, 0], sizes = [1, 64], strides = [1, 1]} : vector<3x64xf32> to vector<1x64xf32>
    %39 = vector.extract_strided_slice %30 {offsets = [2, 0], sizes = [1, 64], strides = [1, 1]} : vector<3x64xf32> to vector<1x64xf32>
    %40 = vector.broadcast %37 : vector<1x64xf32> to vector<8x64xf32>
    %41 = arith.addf %26, %40 : vector<8x64xf32>
    %42 = vector.extract_strided_slice %34 {offsets = [0, 0], sizes = [8, 32], strides = [1, 1]} : vector<8x64xf32> to vector<8x32xf32>
    %43 = vector.extract_strided_slice %35 {offsets = [0, 0], sizes = [8, 32], strides = [1, 1]} : vector<8x64xf32> to vector<8x32xf32>
    %44 = vector.extract_strided_slice %36 {offsets = [0, 0], sizes = [8, 32], strides = [1, 1]} : vector<8x64xf32> to vector<8x32xf32>
    %cst_18 = arith.constant dense<0.000000e+00> : vector<8x8xf32>
    %45 = tpu.matmul %42, %43, %cst_18 {dimension_numbers = #tpu.dot_dimension_numbers<[1], [1], [0], [0], [0, 0, 1, 0], [], []>} : vector<8x32xf32>, vector<8x32xf32>, vector<8x8xf32> -> vector<8x8xf32>
    %cst_19 = arith.constant dense<0xFF800000> : vector<8xf32>
    %46 = vector.multi_reduction <maximumf>, %45, %cst_19 [1] : vector<8x8xf32> to vector<8xf32>
    %47 = vector.shape_cast %46 : vector<8xf32> to vector<8x1xf32>
    %48 = vector.broadcast %47 : vector<8x1xf32> to vector<8x8xf32>
    %49 = arith.subf %45, %48 : vector<8x8xf32>
    %50 = math.exp %49 : vector<8x8xf32>
    %cst_20 = arith.constant dense<0.000000e+00> : vector<8xf32>
    %51 = vector.multi_reduction <add>, %50, %cst_20 [1] : vector<8x8xf32> to vector<8xf32>
    %52 = vector.shape_cast %51 : vector<8xf32> to vector<8x1xf32>
    %53 = tpu.reciprocal %52 {approx = true} : vector<8x1xf32> -> vector<8x1xf32>
    %54 = vector.broadcast %53 : vector<8x1xf32> to vector<8x8xf32>
    %55 = arith.mulf %50, %54 : vector<8x8xf32>
    %cst_21 = arith.constant dense<0.000000e+00> : vector<8x32xf32>
    %56 = tpu.matmul %55, %44, %cst_21 {dimension_numbers = #tpu.dot_dimension_numbers<[1], [0], [0], [1], [0, 0, 1, 1], [], []>} : vector<8x8xf32>, vector<8x32xf32>, vector<8x32xf32> -> vector<8x32xf32>
    %57 = vector.extract_strided_slice %29 {offsets = [0, 0], sizes = [32, 64], strides = [1, 1]} : vector<64x64xf32> to vector<32x64xf32>
    %cst_22 = arith.constant dense<0.000000e+00> : vector<8x64xf32>
    %58 = tpu.matmul %56, %57, %cst_22 {dimension_numbers = #tpu.dot_dimension_numbers<[1], [0], [0], [1], [0, 0, 1, 1], [], []>} : vector<8x32xf32>, vector<32x64xf32>, vector<8x64xf32> -> vector<8x64xf32>
    %59 = arith.addf %41, %58 : vector<8x64xf32>
    %60 = vector.extract_strided_slice %34 {offsets = [0, 32], sizes = [8, 32], strides = [1, 1]} : vector<8x64xf32> to vector<8x32xf32>
    %61 = vector.extract_strided_slice %35 {offsets = [0, 32], sizes = [8, 32], strides = [1, 1]} : vector<8x64xf32> to vector<8x32xf32>
    %62 = vector.extract_strided_slice %36 {offsets = [0, 32], sizes = [8, 32], strides = [1, 1]} : vector<8x64xf32> to vector<8x32xf32>
    %cst_23 = arith.constant dense<0.000000e+00> : vector<8x8xf32>
    %63 = tpu.matmul %60, %61, %cst_23 {dimension_numbers = #tpu.dot_dimension_numbers<[1], [1], [0], [0], [0, 0, 1, 0], [], []>} : vector<8x32xf32>, vector<8x32xf32>, vector<8x8xf32> -> vector<8x8xf32>
    %cst_24 = arith.constant dense<0xFF800000> : vector<8xf32>
    %64 = vector.multi_reduction <maximumf>, %63, %cst_24 [1] : vector<8x8xf32> to vector<8xf32>
    %65 = vector.shape_cast %64 : vector<8xf32> to vector<8x1xf32>
    %66 = vector.broadcast %65 : vector<8x1xf32> to vector<8x8xf32>
    %67 = arith.subf %63, %66 : vector<8x8xf32>
    %68 = math.exp %67 : vector<8x8xf32>
    %cst_25 = arith.constant dense<0.000000e+00> : vector<8xf32>
    %69 = vector.multi_reduction <add>, %68, %cst_25 [1] : vector<8x8xf32> to vector<8xf32>
    %70 = vector.shape_cast %69 : vector<8xf32> to vector<8x1xf32>
    %71 = tpu.reciprocal %70 {approx = true} : vector<8x1xf32> -> vector<8x1xf32>
    %72 = vector.broadcast %71 : vector<8x1xf32> to vector<8x8xf32>
    %73 = arith.mulf %68, %72 : vector<8x8xf32>
    %cst_26 = arith.constant dense<0.000000e+00> : vector<8x32xf32>
    %74 = tpu.matmul %73, %62, %cst_26 {dimension_numbers = #tpu.dot_dimension_numbers<[1], [0], [0], [1], [0, 0, 1, 1], [], []>} : vector<8x8xf32>, vector<8x32xf32>, vector<8x32xf32> -> vector<8x32xf32>
    %75 = vector.extract_strided_slice %29 {offsets = [32, 0], sizes = [32, 64], strides = [1, 1]} : vector<64x64xf32> to vector<32x64xf32>
    %cst_27 = arith.constant dense<0.000000e+00> : vector<8x64xf32>
    %76 = tpu.matmul %74, %75, %cst_27 {dimension_numbers = #tpu.dot_dimension_numbers<[1], [0], [0], [1], [0, 0, 1, 1], [], []>} : vector<8x32xf32>, vector<32x64xf32>, vector<8x64xf32> -> vector<8x64xf32>
    %77 = arith.addf %59, %76 : vector<8x64xf32>
    %cst_28 = arith.constant dense<0.000000e+00> : vector<8xf32>
    %78 = vector.multi_reduction <add>, %77, %cst_28 [1] : vector<8x64xf32> to vector<8xf32>
    %79 = vector.shape_cast %78 : vector<8xf32> to vector<8x1xf32>
    %cst_29 = arith.constant 6.400000e+01 : f32
    %80 = vector.broadcast %cst_29 : f32 to vector<8x1xf32>
    %81 = arith.divf %79, %80 : vector<8x1xf32>
    %82 = vector.broadcast %81 : vector<8x1xf32> to vector<8x64xf32>
    %83 = arith.subf %77, %82 : vector<8x64xf32>
    %84 = arith.mulf %83, %83 : vector<8x64xf32>
    %cst_30 = arith.constant dense<0.000000e+00> : vector<8xf32>
    %85 = vector.multi_reduction <add>, %84, %cst_30 [1] : vector<8x64xf32> to vector<8xf32>
    %86 = vector.shape_cast %85 : vector<8xf32> to vector<8x1xf32>
    %cst_31 = arith.constant 6.400000e+01 : f32
    %87 = vector.broadcast %cst_31 : f32 to vector<8x1xf32>
    %88 = arith.divf %86, %87 : vector<8x1xf32>
    %89 = vector.broadcast %81 : vector<8x1xf32> to vector<8x64xf32>
    %90 = arith.subf %77, %89 : vector<8x64xf32>
    %cst_32 = arith.constant 9.99999996E-13 : f32
    %91 = vector.broadcast %cst_32 : f32 to vector<8x1xf32>
    %92 = arith.addf %88, %91 : vector<8x1xf32>
    %93 = math.rsqrt %92 : vector<8x1xf32>
    %94 = vector.broadcast %93 : vector<8x1xf32> to vector<8x64xf32>
    %95 = arith.mulf %90, %94 : vector<8x64xf32>
    %96 = vector.broadcast %38 : vector<1x64xf32> to vector<8x64xf32>
    %97 = arith.mulf %95, %96 : vector<8x64xf32>
    %98 = vector.broadcast %39 : vector<1x64xf32> to vector<8x64xf32>
    %99 = arith.addf %97, %98 : vector<8x64xf32>
    %c0_33 = arith.constant 0 : index
    %c0_34 = arith.constant 0 : index
    %100 = vector.load %arg7[%c0_33, %c0_34] : memref<64x64xf32, #tpu.memory_space<vmem>>, vector<64x64xf32>
    %c0_35 = arith.constant 0 : index
    %c0_36 = arith.constant 0 : index
    %101 = vector.load %arg8[%c0_35, %c0_36] : memref<128x128xf32, #tpu.memory_space<vmem>>, vector<128x128xf32>
    %c0_37 = arith.constant 0 : index
    %c0_38 = arith.constant 0 : index
    %102 = vector.load %arg9[%c0_37, %c0_38] : memref<1x128xf32, #tpu.memory_space<vmem>>, vector<1x128xf32>
    %c0_39 = arith.constant 0 : index
    %c0_40 = arith.constant 0 : index
    %103 = vector.load %arg10[%c0_39, %c0_40] : memref<64x64xf32, #tpu.memory_space<vmem>>, vector<64x64xf32>
    %c0_41 = arith.constant 0 : index
    %c0_42 = arith.constant 0 : index
    %104 = vector.load %arg11[%c0_41, %c0_42] : memref<4x64xf32, #tpu.memory_space<vmem>>, vector<4x64xf32>
    %cst_43 = arith.constant dense<0.000000e+00> : vector<8x64xf32>
    %105 = tpu.matmul %99, %100, %cst_43 {dimension_numbers = #tpu.dot_dimension_numbers<[1], [0], [0], [1], [0, 0, 1, 1], [], []>} : vector<8x64xf32>, vector<64x64xf32>, vector<8x64xf32> -> vector<8x64xf32>
    %106 = vector.extract_strided_slice %104 {offsets = [0, 0], sizes = [1, 64], strides = [1, 1]} : vector<4x64xf32> to vector<1x64xf32>
    %107 = vector.broadcast %106 : vector<1x64xf32> to vector<8x64xf32>
    %108 = arith.addf %105, %107 : vector<8x64xf32>
    %cst_44 = arith.constant dense<0.000000e+00> : vector<16x128xf32>
    %109 = tpu.matmul %1, %101, %cst_44 {dimension_numbers = #tpu.dot_dimension_numbers<[1], [0], [0], [1], [0, 0, 1, 1], [], []>} : vector<16x128xf32>, vector<128x128xf32>, vector<16x128xf32> -> vector<16x128xf32>
    %110 = vector.broadcast %102 : vector<1x128xf32> to vector<16x128xf32>
    %111 = arith.addf %109, %110 : vector<16x128xf32>
    %112 = vector.extract_strided_slice %111 {offsets = [0, 0], sizes = [16, 64], strides = [1, 1]} : vector<16x128xf32> to vector<16x64xf32>
    %113 = vector.extract_strided_slice %111 {offsets = [0, 64], sizes = [16, 64], strides = [1, 1]} : vector<16x128xf32> to vector<16x64xf32>
    %114 = vector.extract_strided_slice %104 {offsets = [1, 0], sizes = [1, 64], strides = [1, 1]} : vector<4x64xf32> to vector<1x64xf32>
    %115 = vector.extract_strided_slice %104 {offsets = [2, 0], sizes = [1, 64], strides = [1, 1]} : vector<4x64xf32> to vector<1x64xf32>
    %116 = vector.extract_strided_slice %104 {offsets = [3, 0], sizes = [1, 64], strides = [1, 1]} : vector<4x64xf32> to vector<1x64xf32>
    %117 = vector.broadcast %114 : vector<1x64xf32> to vector<8x64xf32>
    %118 = arith.addf %99, %117 : vector<8x64xf32>
    %119 = vector.extract_strided_slice %108 {offsets = [0, 0], sizes = [8, 32], strides = [1, 1]} : vector<8x64xf32> to vector<8x32xf32>
    %120 = vector.extract_strided_slice %112 {offsets = [0, 0], sizes = [16, 32], strides = [1, 1]} : vector<16x64xf32> to vector<16x32xf32>
    %121 = vector.extract_strided_slice %113 {offsets = [0, 0], sizes = [16, 32], strides = [1, 1]} : vector<16x64xf32> to vector<16x32xf32>
    %cst_45 = arith.constant dense<0.000000e+00> : vector<8x16xf32>
    %122 = tpu.matmul %119, %120, %cst_45 {dimension_numbers = #tpu.dot_dimension_numbers<[1], [1], [0], [0], [0, 0, 1, 0], [], []>} : vector<8x32xf32>, vector<16x32xf32>, vector<8x16xf32> -> vector<8x16xf32>
    %cst_46 = arith.constant dense<0xFF800000> : vector<8xf32>
    %123 = vector.multi_reduction <maximumf>, %122, %cst_46 [1] : vector<8x16xf32> to vector<8xf32>
    %124 = vector.shape_cast %123 : vector<8xf32> to vector<8x1xf32>
    %125 = vector.broadcast %124 : vector<8x1xf32> to vector<8x16xf32>
    %126 = arith.subf %122, %125 : vector<8x16xf32>
    %127 = math.exp %126 : vector<8x16xf32>
    %cst_47 = arith.constant dense<0.000000e+00> : vector<8xf32>
    %128 = vector.multi_reduction <add>, %127, %cst_47 [1] : vector<8x16xf32> to vector<8xf32>
    %129 = vector.shape_cast %128 : vector<8xf32> to vector<8x1xf32>
    %130 = tpu.reciprocal %129 {approx = true} : vector<8x1xf32> -> vector<8x1xf32>
    %131 = vector.broadcast %130 : vector<8x1xf32> to vector<8x16xf32>
    %132 = arith.mulf %127, %131 : vector<8x16xf32>
    %cst_48 = arith.constant dense<0.000000e+00> : vector<8x32xf32>
    %133 = tpu.matmul %132, %121, %cst_48 {dimension_numbers = #tpu.dot_dimension_numbers<[1], [0], [0], [1], [0, 0, 1, 1], [], []>} : vector<8x16xf32>, vector<16x32xf32>, vector<8x32xf32> -> vector<8x32xf32>
    %134 = vector.extract_strided_slice %103 {offsets = [0, 0], sizes = [32, 64], strides = [1, 1]} : vector<64x64xf32> to vector<32x64xf32>
    %cst_49 = arith.constant dense<0.000000e+00> : vector<8x64xf32>
    %135 = tpu.matmul %133, %134, %cst_49 {dimension_numbers = #tpu.dot_dimension_numbers<[1], [0], [0], [1], [0, 0, 1, 1], [], []>} : vector<8x32xf32>, vector<32x64xf32>, vector<8x64xf32> -> vector<8x64xf32>
    %136 = arith.addf %118, %135 : vector<8x64xf32>
    %137 = vector.extract_strided_slice %108 {offsets = [0, 32], sizes = [8, 32], strides = [1, 1]} : vector<8x64xf32> to vector<8x32xf32>
    %138 = vector.extract_strided_slice %112 {offsets = [0, 32], sizes = [16, 32], strides = [1, 1]} : vector<16x64xf32> to vector<16x32xf32>
    %139 = vector.extract_strided_slice %113 {offsets = [0, 32], sizes = [16, 32], strides = [1, 1]} : vector<16x64xf32> to vector<16x32xf32>
    %cst_50 = arith.constant dense<0.000000e+00> : vector<8x16xf32>
    %140 = tpu.matmul %137, %138, %cst_50 {dimension_numbers = #tpu.dot_dimension_numbers<[1], [1], [0], [0], [0, 0, 1, 0], [], []>} : vector<8x32xf32>, vector<16x32xf32>, vector<8x16xf32> -> vector<8x16xf32>
    %cst_51 = arith.constant dense<0xFF800000> : vector<8xf32>
    %141 = vector.multi_reduction <maximumf>, %140, %cst_51 [1] : vector<8x16xf32> to vector<8xf32>
    %142 = vector.shape_cast %141 : vector<8xf32> to vector<8x1xf32>
    %143 = vector.broadcast %142 : vector<8x1xf32> to vector<8x16xf32>
    %144 = arith.subf %140, %143 : vector<8x16xf32>
    %145 = math.exp %144 : vector<8x16xf32>
    %cst_52 = arith.constant dense<0.000000e+00> : vector<8xf32>
    %146 = vector.multi_reduction <add>, %145, %cst_52 [1] : vector<8x16xf32> to vector<8xf32>
    %147 = vector.shape_cast %146 : vector<8xf32> to vector<8x1xf32>
    %148 = tpu.reciprocal %147 {approx = true} : vector<8x1xf32> -> vector<8x1xf32>
    %149 = vector.broadcast %148 : vector<8x1xf32> to vector<8x16xf32>
    %150 = arith.mulf %145, %149 : vector<8x16xf32>
    %cst_53 = arith.constant dense<0.000000e+00> : vector<8x32xf32>
    %151 = tpu.matmul %150, %139, %cst_53 {dimension_numbers = #tpu.dot_dimension_numbers<[1], [0], [0], [1], [0, 0, 1, 1], [], []>} : vector<8x16xf32>, vector<16x32xf32>, vector<8x32xf32> -> vector<8x32xf32>
    %152 = vector.extract_strided_slice %103 {offsets = [32, 0], sizes = [32, 64], strides = [1, 1]} : vector<64x64xf32> to vector<32x64xf32>
    %cst_54 = arith.constant dense<0.000000e+00> : vector<8x64xf32>
    %153 = tpu.matmul %151, %152, %cst_54 {dimension_numbers = #tpu.dot_dimension_numbers<[1], [0], [0], [1], [0, 0, 1, 1], [], []>} : vector<8x32xf32>, vector<32x64xf32>, vector<8x64xf32> -> vector<8x64xf32>
    %154 = arith.addf %136, %153 : vector<8x64xf32>
    %cst_55 = arith.constant dense<0.000000e+00> : vector<8xf32>
    %155 = vector.multi_reduction <add>, %154, %cst_55 [1] : vector<8x64xf32> to vector<8xf32>
    %156 = vector.shape_cast %155 : vector<8xf32> to vector<8x1xf32>
    %cst_56 = arith.constant 6.400000e+01 : f32
    %157 = vector.broadcast %cst_56 : f32 to vector<8x1xf32>
    %158 = arith.divf %156, %157 : vector<8x1xf32>
    %159 = vector.broadcast %158 : vector<8x1xf32> to vector<8x64xf32>
    %160 = arith.subf %154, %159 : vector<8x64xf32>
    %161 = arith.mulf %160, %160 : vector<8x64xf32>
    %cst_57 = arith.constant dense<0.000000e+00> : vector<8xf32>
    %162 = vector.multi_reduction <add>, %161, %cst_57 [1] : vector<8x64xf32> to vector<8xf32>
    %163 = vector.shape_cast %162 : vector<8xf32> to vector<8x1xf32>
    %cst_58 = arith.constant 6.400000e+01 : f32
    %164 = vector.broadcast %cst_58 : f32 to vector<8x1xf32>
    %165 = arith.divf %163, %164 : vector<8x1xf32>
    %166 = vector.broadcast %158 : vector<8x1xf32> to vector<8x64xf32>
    %167 = arith.subf %154, %166 : vector<8x64xf32>
    %cst_59 = arith.constant 9.99999996E-13 : f32
    %168 = vector.broadcast %cst_59 : f32 to vector<8x1xf32>
    %169 = arith.addf %165, %168 : vector<8x1xf32>
    %170 = math.rsqrt %169 : vector<8x1xf32>
    %171 = vector.broadcast %170 : vector<8x1xf32> to vector<8x64xf32>
    %172 = arith.mulf %167, %171 : vector<8x64xf32>
    %173 = vector.broadcast %115 : vector<1x64xf32> to vector<8x64xf32>
    %174 = arith.mulf %172, %173 : vector<8x64xf32>
    %175 = vector.broadcast %116 : vector<1x64xf32> to vector<8x64xf32>
    %176 = arith.addf %174, %175 : vector<8x64xf32>
    %c0_60 = arith.constant 0 : index
    %c0_61 = arith.constant 0 : index
    %177 = vector.load %arg12[%c0_60, %c0_61] : memref<64x128xf32, #tpu.memory_space<vmem>>, vector<64x128xf32>
    %c0_62 = arith.constant 0 : index
    %c0_63 = arith.constant 0 : index
    %178 = vector.load %arg13[%c0_62, %c0_63] : memref<1x128xf32, #tpu.memory_space<vmem>>, vector<1x128xf32>
    %c0_64 = arith.constant 0 : index
    %c0_65 = arith.constant 0 : index
    %179 = vector.load %arg14[%c0_64, %c0_65] : memref<128x64xf32, #tpu.memory_space<vmem>>, vector<128x64xf32>
    %c0_66 = arith.constant 0 : index
    %c0_67 = arith.constant 0 : index
    %180 = vector.load %arg15[%c0_66, %c0_67] : memref<3x64xf32, #tpu.memory_space<vmem>>, vector<3x64xf32>
    %cst_68 = arith.constant dense<0.000000e+00> : vector<8x128xf32>
    %181 = tpu.matmul %176, %177, %cst_68 {dimension_numbers = #tpu.dot_dimension_numbers<[1], [0], [0], [1], [0, 0, 1, 1], [], []>} : vector<8x64xf32>, vector<64x128xf32>, vector<8x128xf32> -> vector<8x128xf32>
    %182 = vector.broadcast %178 : vector<1x128xf32> to vector<8x128xf32>
    %183 = arith.addf %181, %182 : vector<8x128xf32>
    %cst_69 = arith.constant 5.000000e-01 : f32
    %184 = vector.broadcast %cst_69 : f32 to vector<8x128xf32>
    %185 = arith.mulf %184, %183 : vector<8x128xf32>
    %cst_70 = arith.constant 0.707106769 : f32
    %186 = vector.broadcast %cst_70 : f32 to vector<8x128xf32>
    %187 = arith.mulf %183, %186 : vector<8x128xf32>
    %cst_71 = arith.constant 0.000000e+00 : f32
    %188 = vector.broadcast %cst_71 : f32 to vector<8x128xf32>
    %189 = arith.cmpf oge, %187, %188 : vector<8x128xf32>
    %cst_72 = arith.constant 1.000000e+00 : f32
    %cst_73 = arith.constant -1.000000e+00 : f32
    %190 = vector.broadcast %cst_72 : f32 to vector<8x128xf32>
    %191 = vector.broadcast %cst_73 : f32 to vector<8x128xf32>
    %192 = arith.select %189, %190, %191 : vector<8x128xi1>, vector<8x128xf32>
    %193 = math.absf %187 : vector<8x128xf32>
    %cst_74 = arith.constant 0.327591091 : f32
    %194 = vector.broadcast %cst_74 : f32 to vector<8x128xf32>
    %195 = arith.mulf %194, %193 : vector<8x128xf32>
    %cst_75 = arith.constant 1.000000e+00 : f32
    %196 = vector.broadcast %cst_75 : f32 to vector<8x128xf32>
    %197 = arith.addf %196, %195 : vector<8x128xf32>
    %cst_76 = arith.constant 1.000000e+00 : f32
    %198 = vector.broadcast %cst_76 : f32 to vector<8x128xf32>
    %199 = arith.divf %198, %197 : vector<8x128xf32>
    %cst_77 = arith.constant 1.06140542 : f32
    %200 = vector.broadcast %cst_77 : f32 to vector<8x128xf32>
    %201 = arith.mulf %200, %199 : vector<8x128xf32>
    %cst_78 = arith.constant -1.45315206 : f32
    %202 = vector.broadcast %cst_78 : f32 to vector<8x128xf32>
    %203 = arith.addf %201, %202 : vector<8x128xf32>
    %204 = arith.mulf %203, %199 : vector<8x128xf32>
    %cst_79 = arith.constant 1.42141378 : f32
    %205 = vector.broadcast %cst_79 : f32 to vector<8x128xf32>
    %206 = arith.addf %204, %205 : vector<8x128xf32>
    %207 = arith.mulf %206, %199 : vector<8x128xf32>
    %cst_80 = arith.constant -0.284496725 : f32
    %208 = vector.broadcast %cst_80 : f32 to vector<8x128xf32>
    %209 = arith.addf %207, %208 : vector<8x128xf32>
    %210 = arith.mulf %209, %199 : vector<8x128xf32>
    %cst_81 = arith.constant 0.254829586 : f32
    %211 = vector.broadcast %cst_81 : f32 to vector<8x128xf32>
    %212 = arith.addf %210, %211 : vector<8x128xf32>
    %213 = arith.mulf %212, %199 : vector<8x128xf32>
    %cst_82 = arith.constant 0.000000e+00 : f32
    %214 = vector.broadcast %cst_82 : f32 to vector<8x128xf32>
    %215 = arith.subf %214, %193 : vector<8x128xf32>
    %216 = arith.mulf %215, %193 : vector<8x128xf32>
    %217 = math.exp %216 : vector<8x128xf32>
    %218 = arith.mulf %213, %217 : vector<8x128xf32>
    %cst_83 = arith.constant 1.000000e+00 : f32
    %219 = vector.broadcast %cst_83 : f32 to vector<8x128xf32>
    %220 = arith.subf %219, %218 : vector<8x128xf32>
    %221 = arith.mulf %192, %220 : vector<8x128xf32>
    %cst_84 = arith.constant 1.000000e+00 : f32
    %222 = vector.broadcast %cst_84 : f32 to vector<8x128xf32>
    %223 = arith.addf %222, %221 : vector<8x128xf32>
    %224 = arith.mulf %185, %223 : vector<8x128xf32>
    %cst_85 = arith.constant dense<0.000000e+00> : vector<8x64xf32>
    %225 = tpu.matmul %224, %179, %cst_85 {dimension_numbers = #tpu.dot_dimension_numbers<[1], [0], [0], [1], [0, 0, 1, 1], [], []>} : vector<8x128xf32>, vector<128x64xf32>, vector<8x64xf32> -> vector<8x64xf32>
    %226 = vector.extract_strided_slice %180 {offsets = [0, 0], sizes = [1, 64], strides = [1, 1]} : vector<3x64xf32> to vector<1x64xf32>
    %227 = vector.broadcast %226 : vector<1x64xf32> to vector<8x64xf32>
    %228 = arith.addf %225, %227 : vector<8x64xf32>
    %229 = arith.addf %228, %176 : vector<8x64xf32>
    %230 = vector.extract_strided_slice %180 {offsets = [1, 0], sizes = [1, 64], strides = [1, 1]} : vector<3x64xf32> to vector<1x64xf32>
    %231 = vector.extract_strided_slice %180 {offsets = [2, 0], sizes = [1, 64], strides = [1, 1]} : vector<3x64xf32> to vector<1x64xf32>
    %cst_86 = arith.constant dense<0.000000e+00> : vector<8xf32>
    %232 = vector.multi_reduction <add>, %229, %cst_86 [1] : vector<8x64xf32> to vector<8xf32>
    %233 = vector.shape_cast %232 : vector<8xf32> to vector<8x1xf32>
    %cst_87 = arith.constant 6.400000e+01 : f32
    %234 = vector.broadcast %cst_87 : f32 to vector<8x1xf32>
    %235 = arith.divf %233, %234 : vector<8x1xf32>
    %236 = vector.broadcast %235 : vector<8x1xf32> to vector<8x64xf32>
    %237 = arith.subf %229, %236 : vector<8x64xf32>
    %238 = arith.mulf %237, %237 : vector<8x64xf32>
    %cst_88 = arith.constant dense<0.000000e+00> : vector<8xf32>
    %239 = vector.multi_reduction <add>, %238, %cst_88 [1] : vector<8x64xf32> to vector<8xf32>
    %240 = vector.shape_cast %239 : vector<8xf32> to vector<8x1xf32>
    %cst_89 = arith.constant 6.400000e+01 : f32
    %241 = vector.broadcast %cst_89 : f32 to vector<8x1xf32>
    %242 = arith.divf %240, %241 : vector<8x1xf32>
    %243 = vector.broadcast %235 : vector<8x1xf32> to vector<8x64xf32>
    %244 = arith.subf %229, %243 : vector<8x64xf32>
    %cst_90 = arith.constant 9.99999996E-13 : f32
    %245 = vector.broadcast %cst_90 : f32 to vector<8x1xf32>
    %246 = arith.addf %242, %245 : vector<8x1xf32>
    %247 = math.rsqrt %246 : vector<8x1xf32>
    %248 = vector.broadcast %247 : vector<8x1xf32> to vector<8x64xf32>
    %249 = arith.mulf %244, %248 : vector<8x64xf32>
    %250 = vector.broadcast %230 : vector<1x64xf32> to vector<8x64xf32>
    %251 = arith.mulf %249, %250 : vector<8x64xf32>
    %252 = vector.broadcast %231 : vector<1x64xf32> to vector<8x64xf32>
    %253 = arith.addf %251, %252 : vector<8x64xf32>
    %c0_91 = arith.constant 0 : index
    %c0_92 = arith.constant 0 : index
    %254 = vector.load %arg16[%c0_91, %c0_92] : memref<64x192xf32, #tpu.memory_space<vmem>>, vector<64x192xf32>
    %c0_93 = arith.constant 0 : index
    %c0_94 = arith.constant 0 : index
    %255 = vector.load %arg17[%c0_93, %c0_94] : memref<1x192xf32, #tpu.memory_space<vmem>>, vector<1x192xf32>
    %c0_95 = arith.constant 0 : index
    %c0_96 = arith.constant 0 : index
    %256 = vector.load %arg18[%c0_95, %c0_96] : memref<64x64xf32, #tpu.memory_space<vmem>>, vector<64x64xf32>
    %c0_97 = arith.constant 0 : index
    %c0_98 = arith.constant 0 : index
    %257 = vector.load %arg19[%c0_97, %c0_98] : memref<3x64xf32, #tpu.memory_space<vmem>>, vector<3x64xf32>
    %cst_99 = arith.constant dense<0.000000e+00> : vector<8x192xf32>
    %258 = tpu.matmul %253, %254, %cst_99 {dimension_numbers = #tpu.dot_dimension_numbers<[1], [0], [0], [1], [0, 0, 1, 1], [], []>} : vector<8x64xf32>, vector<64x192xf32>, vector<8x192xf32> -> vector<8x192xf32>
    %259 = vector.broadcast %255 : vector<1x192xf32> to vector<8x192xf32>
    %260 = arith.addf %258, %259 : vector<8x192xf32>
    %261 = vector.extract_strided_slice %260 {offsets = [0, 0], sizes = [8, 64], strides = [1, 1]} : vector<8x192xf32> to vector<8x64xf32>
    %262 = vector.extract_strided_slice %260 {offsets = [0, 64], sizes = [8, 64], strides = [1, 1]} : vector<8x192xf32> to vector<8x64xf32>
    %263 = vector.extract_strided_slice %260 {offsets = [0, 128], sizes = [8, 64], strides = [1, 1]} : vector<8x192xf32> to vector<8x64xf32>
    %264 = vector.extract_strided_slice %257 {offsets = [0, 0], sizes = [1, 64], strides = [1, 1]} : vector<3x64xf32> to vector<1x64xf32>
    %265 = vector.extract_strided_slice %257 {offsets = [1, 0], sizes = [1, 64], strides = [1, 1]} : vector<3x64xf32> to vector<1x64xf32>
    %266 = vector.extract_strided_slice %257 {offsets = [2, 0], sizes = [1, 64], strides = [1, 1]} : vector<3x64xf32> to vector<1x64xf32>
    %267 = vector.broadcast %264 : vector<1x64xf32> to vector<8x64xf32>
    %268 = arith.addf %253, %267 : vector<8x64xf32>
    %269 = vector.extract_strided_slice %261 {offsets = [0, 0], sizes = [8, 32], strides = [1, 1]} : vector<8x64xf32> to vector<8x32xf32>
    %270 = vector.extract_strided_slice %262 {offsets = [0, 0], sizes = [8, 32], strides = [1, 1]} : vector<8x64xf32> to vector<8x32xf32>
    %271 = vector.extract_strided_slice %263 {offsets = [0, 0], sizes = [8, 32], strides = [1, 1]} : vector<8x64xf32> to vector<8x32xf32>
    %cst_100 = arith.constant dense<0.000000e+00> : vector<8x8xf32>
    %272 = tpu.matmul %269, %270, %cst_100 {dimension_numbers = #tpu.dot_dimension_numbers<[1], [1], [0], [0], [0, 0, 1, 0], [], []>} : vector<8x32xf32>, vector<8x32xf32>, vector<8x8xf32> -> vector<8x8xf32>
    %cst_101 = arith.constant dense<0xFF800000> : vector<8xf32>
    %273 = vector.multi_reduction <maximumf>, %272, %cst_101 [1] : vector<8x8xf32> to vector<8xf32>
    %274 = vector.shape_cast %273 : vector<8xf32> to vector<8x1xf32>
    %275 = vector.broadcast %274 : vector<8x1xf32> to vector<8x8xf32>
    %276 = arith.subf %272, %275 : vector<8x8xf32>
    %277 = math.exp %276 : vector<8x8xf32>
    %cst_102 = arith.constant dense<0.000000e+00> : vector<8xf32>
    %278 = vector.multi_reduction <add>, %277, %cst_102 [1] : vector<8x8xf32> to vector<8xf32>
    %279 = vector.shape_cast %278 : vector<8xf32> to vector<8x1xf32>
    %280 = tpu.reciprocal %279 {approx = true} : vector<8x1xf32> -> vector<8x1xf32>
    %281 = vector.broadcast %280 : vector<8x1xf32> to vector<8x8xf32>
    %282 = arith.mulf %277, %281 : vector<8x8xf32>
    %cst_103 = arith.constant dense<0.000000e+00> : vector<8x32xf32>
    %283 = tpu.matmul %282, %271, %cst_103 {dimension_numbers = #tpu.dot_dimension_numbers<[1], [0], [0], [1], [0, 0, 1, 1], [], []>} : vector<8x8xf32>, vector<8x32xf32>, vector<8x32xf32> -> vector<8x32xf32>
    %284 = vector.extract_strided_slice %256 {offsets = [0, 0], sizes = [32, 64], strides = [1, 1]} : vector<64x64xf32> to vector<32x64xf32>
    %cst_104 = arith.constant dense<0.000000e+00> : vector<8x64xf32>
    %285 = tpu.matmul %283, %284, %cst_104 {dimension_numbers = #tpu.dot_dimension_numbers<[1], [0], [0], [1], [0, 0, 1, 1], [], []>} : vector<8x32xf32>, vector<32x64xf32>, vector<8x64xf32> -> vector<8x64xf32>
    %286 = arith.addf %268, %285 : vector<8x64xf32>
    %287 = vector.extract_strided_slice %261 {offsets = [0, 32], sizes = [8, 32], strides = [1, 1]} : vector<8x64xf32> to vector<8x32xf32>
    %288 = vector.extract_strided_slice %262 {offsets = [0, 32], sizes = [8, 32], strides = [1, 1]} : vector<8x64xf32> to vector<8x32xf32>
    %289 = vector.extract_strided_slice %263 {offsets = [0, 32], sizes = [8, 32], strides = [1, 1]} : vector<8x64xf32> to vector<8x32xf32>
    %cst_105 = arith.constant dense<0.000000e+00> : vector<8x8xf32>
    %290 = tpu.matmul %287, %288, %cst_105 {dimension_numbers = #tpu.dot_dimension_numbers<[1], [1], [0], [0], [0, 0, 1, 0], [], []>} : vector<8x32xf32>, vector<8x32xf32>, vector<8x8xf32> -> vector<8x8xf32>
    %cst_106 = arith.constant dense<0xFF800000> : vector<8xf32>
    %291 = vector.multi_reduction <maximumf>, %290, %cst_106 [1] : vector<8x8xf32> to vector<8xf32>
    %292 = vector.shape_cast %291 : vector<8xf32> to vector<8x1xf32>
    %293 = vector.broadcast %292 : vector<8x1xf32> to vector<8x8xf32>
    %294 = arith.subf %290, %293 : vector<8x8xf32>
    %295 = math.exp %294 : vector<8x8xf32>
    %cst_107 = arith.constant dense<0.000000e+00> : vector<8xf32>
    %296 = vector.multi_reduction <add>, %295, %cst_107 [1] : vector<8x8xf32> to vector<8xf32>
    %297 = vector.shape_cast %296 : vector<8xf32> to vector<8x1xf32>
    %298 = tpu.reciprocal %297 {approx = true} : vector<8x1xf32> -> vector<8x1xf32>
    %299 = vector.broadcast %298 : vector<8x1xf32> to vector<8x8xf32>
    %300 = arith.mulf %295, %299 : vector<8x8xf32>
    %cst_108 = arith.constant dense<0.000000e+00> : vector<8x32xf32>
    %301 = tpu.matmul %300, %289, %cst_108 {dimension_numbers = #tpu.dot_dimension_numbers<[1], [0], [0], [1], [0, 0, 1, 1], [], []>} : vector<8x8xf32>, vector<8x32xf32>, vector<8x32xf32> -> vector<8x32xf32>
    %302 = vector.extract_strided_slice %256 {offsets = [32, 0], sizes = [32, 64], strides = [1, 1]} : vector<64x64xf32> to vector<32x64xf32>
    %cst_109 = arith.constant dense<0.000000e+00> : vector<8x64xf32>
    %303 = tpu.matmul %301, %302, %cst_109 {dimension_numbers = #tpu.dot_dimension_numbers<[1], [0], [0], [1], [0, 0, 1, 1], [], []>} : vector<8x32xf32>, vector<32x64xf32>, vector<8x64xf32> -> vector<8x64xf32>
    %304 = arith.addf %286, %303 : vector<8x64xf32>
    %cst_110 = arith.constant dense<0.000000e+00> : vector<8xf32>
    %305 = vector.multi_reduction <add>, %304, %cst_110 [1] : vector<8x64xf32> to vector<8xf32>
    %306 = vector.shape_cast %305 : vector<8xf32> to vector<8x1xf32>
    %cst_111 = arith.constant 6.400000e+01 : f32
    %307 = vector.broadcast %cst_111 : f32 to vector<8x1xf32>
    %308 = arith.divf %306, %307 : vector<8x1xf32>
    %309 = vector.broadcast %308 : vector<8x1xf32> to vector<8x64xf32>
    %310 = arith.subf %304, %309 : vector<8x64xf32>
    %311 = arith.mulf %310, %310 : vector<8x64xf32>
    %cst_112 = arith.constant dense<0.000000e+00> : vector<8xf32>
    %312 = vector.multi_reduction <add>, %311, %cst_112 [1] : vector<8x64xf32> to vector<8xf32>
    %313 = vector.shape_cast %312 : vector<8xf32> to vector<8x1xf32>
    %cst_113 = arith.constant 6.400000e+01 : f32
    %314 = vector.broadcast %cst_113 : f32 to vector<8x1xf32>
    %315 = arith.divf %313, %314 : vector<8x1xf32>
    %316 = vector.broadcast %308 : vector<8x1xf32> to vector<8x64xf32>
    %317 = arith.subf %304, %316 : vector<8x64xf32>
    %cst_114 = arith.constant 9.99999996E-13 : f32
    %318 = vector.broadcast %cst_114 : f32 to vector<8x1xf32>
    %319 = arith.addf %315, %318 : vector<8x1xf32>
    %320 = math.rsqrt %319 : vector<8x1xf32>
    %321 = vector.broadcast %320 : vector<8x1xf32> to vector<8x64xf32>
    %322 = arith.mulf %317, %321 : vector<8x64xf32>
    %323 = vector.broadcast %265 : vector<1x64xf32> to vector<8x64xf32>
    %324 = arith.mulf %322, %323 : vector<8x64xf32>
    %325 = vector.broadcast %266 : vector<1x64xf32> to vector<8x64xf32>
    %326 = arith.addf %324, %325 : vector<8x64xf32>
    %c0_115 = arith.constant 0 : index
    %c0_116 = arith.constant 0 : index
    %327 = vector.load %arg20[%c0_115, %c0_116] : memref<64x128xf32, #tpu.memory_space<vmem>>, vector<64x128xf32>
    %c0_117 = arith.constant 0 : index
    %c0_118 = arith.constant 0 : index
    %328 = vector.load %arg21[%c0_117, %c0_118] : memref<1x128xf32, #tpu.memory_space<vmem>>, vector<1x128xf32>
    %c0_119 = arith.constant 0 : index
    %c0_120 = arith.constant 0 : index
    %329 = vector.load %arg22[%c0_119, %c0_120] : memref<128x64xf32, #tpu.memory_space<vmem>>, vector<128x64xf32>
    %c0_121 = arith.constant 0 : index
    %c0_122 = arith.constant 0 : index
    %330 = vector.load %arg23[%c0_121, %c0_122] : memref<3x64xf32, #tpu.memory_space<vmem>>, vector<3x64xf32>
    %cst_123 = arith.constant dense<0.000000e+00> : vector<8x128xf32>
    %331 = tpu.matmul %326, %327, %cst_123 {dimension_numbers = #tpu.dot_dimension_numbers<[1], [0], [0], [1], [0, 0, 1, 1], [], []>} : vector<8x64xf32>, vector<64x128xf32>, vector<8x128xf32> -> vector<8x128xf32>
    %332 = vector.broadcast %328 : vector<1x128xf32> to vector<8x128xf32>
    %333 = arith.addf %331, %332 : vector<8x128xf32>
    %cst_124 = arith.constant 5.000000e-01 : f32
    %334 = vector.broadcast %cst_124 : f32 to vector<8x128xf32>
    %335 = arith.mulf %334, %333 : vector<8x128xf32>
    %cst_125 = arith.constant 0.707106769 : f32
    %336 = vector.broadcast %cst_125 : f32 to vector<8x128xf32>
    %337 = arith.mulf %333, %336 : vector<8x128xf32>
    %cst_126 = arith.constant 0.000000e+00 : f32
    %338 = vector.broadcast %cst_126 : f32 to vector<8x128xf32>
    %339 = arith.cmpf oge, %337, %338 : vector<8x128xf32>
    %cst_127 = arith.constant 1.000000e+00 : f32
    %cst_128 = arith.constant -1.000000e+00 : f32
    %340 = vector.broadcast %cst_127 : f32 to vector<8x128xf32>
    %341 = vector.broadcast %cst_128 : f32 to vector<8x128xf32>
    %342 = arith.select %339, %340, %341 : vector<8x128xi1>, vector<8x128xf32>
    %343 = math.absf %337 : vector<8x128xf32>
    %cst_129 = arith.constant 0.327591091 : f32
    %344 = vector.broadcast %cst_129 : f32 to vector<8x128xf32>
    %345 = arith.mulf %344, %343 : vector<8x128xf32>
    %cst_130 = arith.constant 1.000000e+00 : f32
    %346 = vector.broadcast %cst_130 : f32 to vector<8x128xf32>
    %347 = arith.addf %346, %345 : vector<8x128xf32>
    %cst_131 = arith.constant 1.000000e+00 : f32
    %348 = vector.broadcast %cst_131 : f32 to vector<8x128xf32>
    %349 = arith.divf %348, %347 : vector<8x128xf32>
    %cst_132 = arith.constant 1.06140542 : f32
    %350 = vector.broadcast %cst_132 : f32 to vector<8x128xf32>
    %351 = arith.mulf %350, %349 : vector<8x128xf32>
    %cst_133 = arith.constant -1.45315206 : f32
    %352 = vector.broadcast %cst_133 : f32 to vector<8x128xf32>
    %353 = arith.addf %351, %352 : vector<8x128xf32>
    %354 = arith.mulf %353, %349 : vector<8x128xf32>
    %cst_134 = arith.constant 1.42141378 : f32
    %355 = vector.broadcast %cst_134 : f32 to vector<8x128xf32>
    %356 = arith.addf %354, %355 : vector<8x128xf32>
    %357 = arith.mulf %356, %349 : vector<8x128xf32>
    %cst_135 = arith.constant -0.284496725 : f32
    %358 = vector.broadcast %cst_135 : f32 to vector<8x128xf32>
    %359 = arith.addf %357, %358 : vector<8x128xf32>
    %360 = arith.mulf %359, %349 : vector<8x128xf32>
    %cst_136 = arith.constant 0.254829586 : f32
    %361 = vector.broadcast %cst_136 : f32 to vector<8x128xf32>
    %362 = arith.addf %360, %361 : vector<8x128xf32>
    %363 = arith.mulf %362, %349 : vector<8x128xf32>
    %cst_137 = arith.constant 0.000000e+00 : f32
    %364 = vector.broadcast %cst_137 : f32 to vector<8x128xf32>
    %365 = arith.subf %364, %343 : vector<8x128xf32>
    %366 = arith.mulf %365, %343 : vector<8x128xf32>
    %367 = math.exp %366 : vector<8x128xf32>
    %368 = arith.mulf %363, %367 : vector<8x128xf32>
    %cst_138 = arith.constant 1.000000e+00 : f32
    %369 = vector.broadcast %cst_138 : f32 to vector<8x128xf32>
    %370 = arith.subf %369, %368 : vector<8x128xf32>
    %371 = arith.mulf %342, %370 : vector<8x128xf32>
    %cst_139 = arith.constant 1.000000e+00 : f32
    %372 = vector.broadcast %cst_139 : f32 to vector<8x128xf32>
    %373 = arith.addf %372, %371 : vector<8x128xf32>
    %374 = arith.mulf %335, %373 : vector<8x128xf32>
    %cst_140 = arith.constant dense<0.000000e+00> : vector<8x64xf32>
    %375 = tpu.matmul %374, %329, %cst_140 {dimension_numbers = #tpu.dot_dimension_numbers<[1], [0], [0], [1], [0, 0, 1, 1], [], []>} : vector<8x128xf32>, vector<128x64xf32>, vector<8x64xf32> -> vector<8x64xf32>
    %376 = vector.extract_strided_slice %330 {offsets = [0, 0], sizes = [1, 64], strides = [1, 1]} : vector<3x64xf32> to vector<1x64xf32>
    %377 = vector.broadcast %376 : vector<1x64xf32> to vector<8x64xf32>
    %378 = arith.addf %375, %377 : vector<8x64xf32>
    %379 = arith.addf %378, %326 : vector<8x64xf32>
    %380 = vector.extract_strided_slice %330 {offsets = [1, 0], sizes = [1, 64], strides = [1, 1]} : vector<3x64xf32> to vector<1x64xf32>
    %381 = vector.extract_strided_slice %330 {offsets = [2, 0], sizes = [1, 64], strides = [1, 1]} : vector<3x64xf32> to vector<1x64xf32>
    %cst_141 = arith.constant dense<0.000000e+00> : vector<8xf32>
    %382 = vector.multi_reduction <add>, %379, %cst_141 [1] : vector<8x64xf32> to vector<8xf32>
    %383 = vector.shape_cast %382 : vector<8xf32> to vector<8x1xf32>
    %cst_142 = arith.constant 6.400000e+01 : f32
    %384 = vector.broadcast %cst_142 : f32 to vector<8x1xf32>
    %385 = arith.divf %383, %384 : vector<8x1xf32>
    %386 = vector.broadcast %385 : vector<8x1xf32> to vector<8x64xf32>
    %387 = arith.subf %379, %386 : vector<8x64xf32>
    %388 = arith.mulf %387, %387 : vector<8x64xf32>
    %cst_143 = arith.constant dense<0.000000e+00> : vector<8xf32>
    %389 = vector.multi_reduction <add>, %388, %cst_143 [1] : vector<8x64xf32> to vector<8xf32>
    %390 = vector.shape_cast %389 : vector<8xf32> to vector<8x1xf32>
    %cst_144 = arith.constant 6.400000e+01 : f32
    %391 = vector.broadcast %cst_144 : f32 to vector<8x1xf32>
    %392 = arith.divf %390, %391 : vector<8x1xf32>
    %393 = vector.broadcast %385 : vector<8x1xf32> to vector<8x64xf32>
    %394 = arith.subf %379, %393 : vector<8x64xf32>
    %cst_145 = arith.constant 9.99999996E-13 : f32
    %395 = vector.broadcast %cst_145 : f32 to vector<8x1xf32>
    %396 = arith.addf %392, %395 : vector<8x1xf32>
    %397 = math.rsqrt %396 : vector<8x1xf32>
    %398 = vector.broadcast %397 : vector<8x1xf32> to vector<8x64xf32>
    %399 = arith.mulf %394, %398 : vector<8x64xf32>
    %400 = vector.broadcast %380 : vector<1x64xf32> to vector<8x64xf32>
    %401 = arith.mulf %399, %400 : vector<8x64xf32>
    %402 = vector.broadcast %381 : vector<1x64xf32> to vector<8x64xf32>
    %403 = arith.addf %401, %402 : vector<8x64xf32>
    %c0_146 = arith.constant 0 : index
    %c0_147 = arith.constant 0 : index
    %404 = vector.load %arg24[%c0_146, %c0_147] : memref<8x64xf32, #tpu.memory_space<vmem>>, vector<8x64xf32>
    tpu.vector_store %arg24[%c0_146, %c0_147], %403 {strides = array<i32>} : memref<8x64xf32, #tpu.memory_space<vmem>>, vector<8x64xf32>,
    return
  }
}

</mosaic_0001>

<bundles_post_ra>
// kernel: tpu_custom_call.1
= control target key start
LH: loop header
LB: loop body
LE: loop exit
PB: predicated region body
PF: predicated region fallthrough
CT: control target
= control target key end

     0   :  { %s4753_s0 = inlined_call_operand.hbm [shape: f32[8,64], index: 0, kind: input, shape index: {}]   ;;  %s4754_s1 = inlined_call_operand.hbm [shape: f32[16,128], index: 1, kind: input, shape index: {}]   ;;  %s4755_s2 = inlined_call_operand.hbm [shape: f32[2,64], index: 2, kind: input, shape index: {}]   ;;  %s4756_s3 = inlined_call_operand.vmem [shape: f32[64,192], index: 3, kind: input, shape index: {}]   ;;  %s4757_s4 = inlined_call_operand.hbm [shape: f32[1,192], index: 4, kind: input, shape index: {}]   ;;  %s4758_s5 = inlined_call_operand.hbm [shape: f32[64,64], index: 5, kind: input, shape index: {}]   ;;  %s4759_s6 = inlined_call_operand.hbm [shape: f32[3,64], index: 6, kind: input, shape index: {}]   ;;  %s4760_s7 = inlined_call_operand.hbm [shape: f32[64,64], index: 7, kind: input, shape index: {}]   ;;  %s4761_s8 = inlined_call_operand.vmem [shape: f32[128,128], index: 8, kind: input, shape index: {}]   ;;  %s4762_s9 = inlined_call_operand.hbm [shape: f32[1,128], index: 9, kind: input, shape index: {}]   ;;  %s4763_s10 = inlined_call_operand.hbm [shape: f32[64,64], index: 10, kind: input, shape index: {}]   ;;  %s4764_s11 = inlined_call_operand.hbm [shape: f32[4,64], index: 11, kind: input, shape index: {}]   ;;  %s4765_s12 = inlined_call_operand.hbm [shape: f32[64,128], index: 12, kind: input, shape index: {}]   ;;  %s4766_s13 = inlined_call_operand.hbm [shape: f32[1,128], index: 13, kind: input, shape index: {}]   ;;  %s4767_s14 = inlined_call_operand.vmem [shape: f32[128,64], index: 14, kind: input, shape index: {}]   ;;  %s4768_s15 = inlined_call_operand.hbm [shape: f32[3,64], index: 15, kind: input, shape index: {}]   ;;  %s4769_s16 = inlined_call_operand.vmem [shape: f32[64,192], index: 16, kind: input, shape index: {}]   ;;  %s4770_s17 = inlined_call_operand.hbm [shape: f32[1,192], index: 17, kind: input, shape index: {}]   ;;  %s4771_s18 = inlined_call_operand.hbm [shape: f32[64,64], index: 18, kind: input, shape index: {}]   ;;  %s4772_s19 = inlined_call_operand.vmem [shape: f32[3,64], index: 19, kind: input, shape index: {}]   ;;  %s4773_s20 = inlined_call_operand.hbm [shape: f32[64,128], index: 20, kind: input, shape index: {}]   ;;  %s4774_s21 = inlined_call_operand.vmem [shape: f32[1,128], index: 21, kind: input, shape index: {}]   ;;  %s4775_s22 = inlined_call_operand.vmem [shape: f32[128,64], index: 22, kind: input, shape index: {}]   ;;  %s4776_s23 = inlined_call_operand.vmem [shape: f32[3,64], index: 23, kind: input, shape index: {}]   ;;  %s4777_s24 = inlined_call_operand.hbm [shape: f32[8,64], index: 24, kind: output, shape index: {}]  }
   0x1   :  { %4788 = sst [smem:[#allocation39_spill]] %s4753_s0 }
   0x2   :  { %4789 = sst [smem:[#allocation40_spill]] %s4754_s1 }
   0x3   :  { %4790 = sst [smem:[#allocation41_spill]] %s4755_s2 }
   0x4   :  { %4791 = sst [smem:[#allocation42_spill]] %s4756_s3 }
   0x5   :  { %4792 = sst [smem:[#allocation43_spill]] %s4757_s4 }
   0x6   :  { %4793 = sst [smem:[#allocation44_spill]] %s4758_s5 }
   0x7   :  { %4794 = sst [smem:[#allocation45_spill]] %s4759_s6 }
   0x8   :  { %4795 = sst [smem:[#allocation46_spill]] %s4760_s7 }
   0x9   :  { %4796 = sst [smem:[#allocation47_spill]] %s4761_s8 }
   0xa   :  { %4797 = sst [smem:[#allocation48_spill]] %s4774_s21 }
   0xb   :  { %4798 = sst [smem:[#allocation49_spill]] %s4776_s23 }
   0xc   :  { %4799 = sst [smem:[#allocation50_spill]] %s4777_s24 }
   0xd   :  { %29 = vsyncpa [#allocation3], 0 }
   0xe   :  { %30 = vsyncpa [#allocation6], 0 }
   0xf   :  { %31 = vsyncpa [#allocation9], 0 }
  0x10   :  { %32 = vsyncpa [#allocation12], 0 }
  0x11   :  { %33 = vsyncpa [#allocation15], 0 }
  0x12   :  { %34 = vsyncpa [#allocation18], 0 }
  0x13   :  { %35 = vsyncpa [#allocation21], 0 }
  0x14   :  { %36 = vsyncpa [#allocation24], 0 }
  0x15   :  { %37 = vsyncpa [#allocation27], 0 }
  0x16   :  { %38 = vsyncpa [#allocation4], 0  ;;  %s3883_s5 = smov [#allocation5]   ;;  %s4800_s6 = sld [smem:[#allocation40_spill]] }
  0x17   :  { %s54_s26 = sshll.u32 %s3883_s5, 4  ;;  %s55_s26 = int_to_ptr.vmem [resolvable:$true] %s54_s26 }
  0x1c   :  { %s3489_s2 = scalar_lea.hbm %s4800_s6, 256 }
  0x1d   :  { %p3490_p0 = scmp.ne.s32.totalorder %s4800_s6, %s3489_s2  ;;  %p3493_p1 = scmp.lt.u32.totalorder %s3489_s2, %s4800_s6 }
  0x1f   :  { %p3495_p2 = pnand %p3493_p1, %p3490_p0 }
  0x21   :  { %3498 = shalt.err (!%p3495_p2)
}
  0x22   :  { %s3499_s3 = scalar_lea.vmem %s55_s26, 256  ;;  %p3504_p4 = scmp.lt.s32.totalorder %s55_s26, %s55_s26 }
  0x23   :  { %p3500_p3 = scmp.ne.s32.totalorder %s55_s26, %s3499_s3  ;;  %p3505_p5 = scmp.lt.s32.totalorder %s3499_s3, %s3499_s3 }
  0x25   :  { %p3506_p6 = por %p3505_p5, %p3504_p4 }
  0x27   :  { %p3507_p7 = pnand %p3506_p6, %p3500_p3 }
  0x29   :  { %3510 = shalt.err (!%p3507_p7)
}
  0x2a   :  { %s3884_s25 = smov 128   ;;  %s3885_s8 = smov 8  }
  0x2b   :  { %60 = dma.hbm_to_vmem [thread:$0]  %s4800_s6, 256, %s55_s26, [#allocation6], %s3884_s25, %s3884_s25, %s3885_s8  }
  0x2c   :  { %s3886_s5 = smov [#allocation8]   ;;  %s3887_s28 = smov [#allocation11]  }
  0x2d   :  { %s79_s27 = sshll.u32 %s3886_s5, 4  ;;  %s101_s2 = sshll.u32 %s3887_s28, 4  ;;  %s80_s27 = int_to_ptr.vmem [resolvable:$true] %s79_s27  ;;  %s102_s2 = int_to_ptr.vmem [resolvable:$true] %s101_s2 }
  0x2e   :  { %s4801_s7 = sld [smem:[#allocation43_spill]] }
  0x34   :  { %s3511_s30 = scalar_lea.hbm %s4801_s7, 32 }
  0x35   :  { %p3512_p8 = scmp.ne.s32.totalorder %s4801_s7, %s3511_s30  ;;  %p3515_p9 = scmp.lt.u32.totalorder %s3511_s30, %s4801_s7 }
  0x37   :  { %p3517_p10 = pnand %p3515_p9, %p3512_p8 }
  0x39   :  { %3520 = shalt.err (!%p3517_p10)
}
  0x3a   :  { %s3521_s26 = scalar_lea.vmem %s80_s27, 32  ;;  %p3526_p12 = scmp.lt.s32.totalorder %s80_s27, %s80_s27 }
  0x3b   :  { %p3522_p11 = scmp.ne.s32.totalorder %s80_s27, %s3521_s26  ;;  %p3527_p13 = scmp.lt.s32.totalorder %s3521_s26, %s3521_s26 }
  0x3d   :  { %p3528_p0 = por %p3527_p13, %p3526_p12 }
  0x3f   :  { %p3529_p1 = pnand %p3528_p0, %p3522_p11 }
  0x41   :  { %3532 = shalt.err (!%p3529_p1)
}
  0x42   :  { %82 = dma.hbm_to_vmem [thread:$0]  %s4801_s7, 32, %s80_s27, [#allocation9]  }
  0x43   :  { %s4802_s5 = sld [smem:[#allocation45_spill]] }
  0x49   :  { %s3533_s28 = scalar_lea.hbm %s4802_s5, 64 }
  0x4a   :  { %p3534_p2 = scmp.ne.s32.totalorder %s4802_s5, %s3533_s28  ;;  %p3537_p3 = scmp.lt.u32.totalorder %s3533_s28, %s4802_s5 }
  0x4c   :  { %p3539_p4 = pnand %p3537_p3, %p3534_p2 }
  0x4e   :  { %3542 = shalt.err (!%p3539_p4)
}
  0x4f   :  { %s3543_s30 = scalar_lea.vmem %s102_s2, 64  ;;  %p3548_p6 = scmp.lt.s32.totalorder %s102_s2, %s102_s2 }
  0x50   :  { %p3544_p5 = scmp.ne.s32.totalorder %s102_s2, %s3543_s30  ;;  %p3549_p7 = scmp.lt.s32.totalorder %s3543_s30, %s3543_s30 }
  0x52   :  { %p3550_p8 = por %p3549_p7, %p3548_p6 }
  0x54   :  { %p3551_p9 = pnand %p3550_p8, %p3544_p5 }
  0x56   :  { %3554 = shalt.err (!%p3551_p9)
}
  0x57   :  { %104 = dma.hbm_to_vmem [thread:$0]  %s4802_s5, 64, %s102_s2, [#allocation12]  }
  0x58   :  { %s3888_s3 = smov [#allocation14]   ;;  %s3889_s6 = smov [#allocation17]  }
  0x59   :  { %s125_s26 = sshll.u32 %s3888_s3, 4  ;;  %s147_s4 = sshll.u32 %s3889_s6, 4  ;;  %s126_s26 = int_to_ptr.vmem [resolvable:$true] %s125_s26  ;;  %s148_s4 = int_to_ptr.vmem [resolvable:$true] %s147_s4 }
  0x5a   :  { %s3555_s28 = scalar_lea.hbm %s4762_s9, 16 }
  0x5b   :  { %p3556_p10 = scmp.ne.s32.totalorder %s4762_s9, %s3555_s28  ;;  %p3559_p11 = scmp.lt.u32.totalorder %s3555_s28, %s4762_s9 }
  0x5d   :  { %p3561_p12 = pnand %p3559_p11, %p3556_p10 }
  0x5f   :  { %3564 = shalt.err (!%p3561_p12)
}
  0x60   :  { %s3565_s2 = scalar_lea.vmem %s126_s26, 16  ;;  %s3569_s5 = scalar_lea.vmem %s126_s26, 32 }
  0x61   :  { %p3566_p13 = scmp.ne.s32.totalorder %s126_s26, %s3565_s2  ;;  %p3570_p0 = scmp.lt.s32.totalorder %s126_s26, %s126_s26 }
  0x62   :  { %p3571_p1 = scmp.lt.s32.totalorder %s3569_s5, %s3565_s2 }
  0x64   :  { %p3572_p2 = por %p3571_p1, %p3570_p0 }
  0x66   :  { %p3573_p3 = pnand %p3572_p2, %p3566_p13 }
  0x68   :  { %3576 = shalt.err (!%p3573_p3)
}
  0x69   :  { %128 = dma.hbm_to_vmem [thread:$0]  %s4762_s9, 16, %s126_s26, [#allocation15]  }
  0x6a   :  { %s3577_s6 = scalar_lea.hbm %s4764_s11, 64 }
  0x6b   :  { %p3578_p4 = scmp.ne.s32.totalorder %s4764_s11, %s3577_s6  ;;  %p3581_p5 = scmp.lt.u32.totalorder %s3577_s6, %s4764_s11 }
  0x6d   :  { %p3583_p6 = pnand %p3581_p5, %p3578_p4 }
  0x6f   :  { %3586 = shalt.err (!%p3583_p6)
}
  0x70   :  { %s3587_s23 = scalar_lea.vmem %s148_s4, 64  ;;  %p3592_p8 = scmp.lt.s32.totalorder %s148_s4, %s148_s4 }
  0x71   :  { %p3588_p7 = scmp.ne.s32.totalorder %s148_s4, %s3587_s23  ;;  %p3593_p9 = scmp.lt.s32.totalorder %s3587_s23, %s3587_s23 }
  0x73   :  { %p3594_p10 = por %p3593_p9, %p3592_p8 }
  0x75   :  { %p3595_p11 = pnand %p3594_p10, %p3588_p7 }
  0x77   :  { %3598 = shalt.err (!%p3595_p11)
}
  0x78   :  { %150 = dma.hbm_to_vmem [thread:$0]  %s4764_s11, 64, %s148_s4, [#allocation18]  }
  0x79   :  { %s3890_s29 = smov [#allocation20]   ;;  %s3891_s2 = smov [#allocation23]  }
  0x7a   :  { %s169_s0 = sshll.u32 %s3890_s29, 4  ;;  %s193_s5 = sshll.u32 %s3891_s2, 4  ;;  %s170_s0 = int_to_ptr.vmem [resolvable:$true] %s169_s0  ;;  %s194_s5 = int_to_ptr.vmem [resolvable:$true] %s193_s5 }
  0x7b   :  { %s3599_s7 = scalar_lea.hbm %s4766_s13, 16 }
  0x7c   :  { %p3600_p12 = scmp.ne.s32.totalorder %s4766_s13, %s3599_s7  ;;  %p3603_p13 = scmp.lt.u32.totalorder %s3599_s7, %s4766_s13 }
  0x7e   :  { %p3605_p0 = pnand %p3603_p13, %p3600_p12 }
  0x80   :  { %3608 = shalt.err (!%p3605_p0)
}
  0x81   :  { %s3609_s11 = scalar_lea.vmem %s170_s0, 16  ;;  %s3613_s4 = scalar_lea.vmem %s170_s0, 32 }
  0x82   :  { %p3610_p1 = scmp.ne.s32.totalorder %s170_s0, %s3609_s11  ;;  %p3614_p2 = scmp.lt.s32.totalorder %s170_s0, %s170_s0 }
  0x83   :  { %p3615_p3 = scmp.lt.s32.totalorder %s3613_s4, %s3609_s11 }
  0x85   :  { %p3616_p4 = por %p3615_p3, %p3614_p2 }
  0x87   :  { %p3617_p5 = pnand %p3616_p4, %p3610_p1 }
  0x89   :  { %3620 = shalt.err (!%p3617_p5)
}
  0x8a   :  { %172 = dma.hbm_to_vmem [thread:$0]  %s4766_s13, 16, %s170_s0, [#allocation21]  }
  0x8b   :  { %s3621_s26 = scalar_lea.hbm %s4770_s17, 32 }
  0x8c   :  { %p3622_p6 = scmp.ne.s32.totalorder %s4770_s17, %s3621_s26  ;;  %p3625_p7 = scmp.lt.u32.totalorder %s3621_s26, %s4770_s17 }
  0x8e   :  { %p3627_p8 = pnand %p3625_p7, %p3622_p6 }
  0x90   :  { %3630 = shalt.err (!%p3627_p8)
}
  0x91   :  { %s3631_s7 = scalar_lea.vmem %s194_s5, 32  ;;  %p3636_p10 = scmp.lt.s32.totalorder %s194_s5, %s194_s5 }
  0x92   :  { %p3632_p9 = scmp.ne.s32.totalorder %s194_s5, %s3631_s7  ;;  %p3637_p11 = scmp.lt.s32.totalorder %s3631_s7, %s3631_s7 }
  0x94   :  { %p3638_p12 = por %p3637_p11, %p3636_p10 }
  0x96   :  { %p3639_p13 = pnand %p3638_p12, %p3632_p9 }
  0x98   :  { %3642 = shalt.err (!%p3639_p13)
}
  0x99   :  { %196 = dma.hbm_to_vmem [thread:$0]  %s4770_s17, 32, %s194_s5, [#allocation24]  }
  0x9a   :  { %s3892_s3 = smov [#allocation2]   ;;  %s3893_s24 = smov [#allocation7]  }
  0x9b   :  { %s45_s6 = sshll.u32 %s3892_s3, 4  ;;  %s67_s1 = sshll.u32 %s3893_s24, 4  ;;  %s46_s6 = int_to_ptr.vmem [resolvable:$true] %s45_s6  ;;  %s68_s1 = int_to_ptr.vmem [resolvable:$true] %s67_s1 }
  0x9c   :  { %s4803_s28 = sld [smem:[#allocation39_spill]] }
  0xa2   :  { %s3643_s21 = scalar_lea.hbm %s4803_s28, 128 }
  0xa3   :  { %p3644_p0 = scmp.ne.s32.totalorder %s4803_s28, %s3643_s21  ;;  %p3647_p1 = scmp.lt.u32.totalorder %s3643_s21, %s4803_s28 }
  0xa5   :  { %p3649_p2 = pnand %p3647_p1, %p3644_p0 }
  0xa7   :  { %3652 = shalt.err (!%p3649_p2)
}
  0xa8   :  { %s3653_s17 = scalar_lea.vmem %s46_s6, 128  ;;  %p3658_p4 = scmp.lt.s32.totalorder %s46_s6, %s46_s6 }
  0xa9   :  { %p3654_p3 = scmp.ne.s32.totalorder %s46_s6, %s3653_s17  ;;  %p3659_p5 = scmp.lt.s32.totalorder %s3653_s17, %s3653_s17 }
  0xab   :  { %p3660_p6 = por %p3659_p5, %p3658_p4 }
  0xad   :  { %p3661_p7 = pnand %p3660_p6, %p3654_p3 }
  0xaf   :  { %3664 = shalt.err (!%p3661_p7)
}
  0xb0   :  { %48 = dma.hbm_to_vmem [thread:$0]  %s4803_s28, 128, %s46_s6, [#allocation3]  }
  0xb1   :  { %s4804_s7 = sld [smem:[#allocation41_spill]] }
  0xb7   :  { %s3665_s13 = scalar_lea.hbm %s4804_s7, 32 }
  0xb8   :  { %p3666_p8 = scmp.ne.s32.totalorder %s4804_s7, %s3665_s13  ;;  %p3669_p9 = scmp.lt.u32.totalorder %s3665_s13, %s4804_s7 }
  0xba   :  { %p3671_p10 = pnand %p3669_p9, %p3666_p8 }
  0xbc   :  { %3674 = shalt.err (!%p3671_p10)
}
  0xbd   :  { %s3675_s4 = scalar_lea.vmem %s68_s1, 32  ;;  %p3680_p12 = scmp.lt.s32.totalorder %s68_s1, %s68_s1 }
  0xbe   :  { %p3676_p11 = scmp.ne.s32.totalorder %s68_s1, %s3675_s4  ;;  %p3681_p13 = scmp.lt.s32.totalorder %s3675_s4, %s3675_s4 }
  0xc0   :  { %p3682_p0 = por %p3681_p13, %p3680_p12 }
  0xc2   :  { %p3683_p1 = pnand %p3682_p0, %p3676_p11 }
  0xc4   :  { %3686 = shalt.err (!%p3683_p1)
}
  0xc5   :  { %70 = dma.hbm_to_vmem [thread:$0]  %s4804_s7, 32, %s68_s1, [#allocation6]  }
  0xc6   :  { %s3894_s21 = smov [#allocation10]   ;;  %s3895_s9 = smov [#allocation13]  }
  0xc7   :  { %s88_s23 = sshll.u32 %s3894_s21, 4  ;;  %s110_s26 = sshll.u32 %s3895_s9, 4  ;;  %s89_s23 = int_to_ptr.vmem [resolvable:$true] %s88_s23  ;;  %s111_s26 = int_to_ptr.vmem [resolvable:$true] %s110_s26 }
  0xc8   :  { %s4805_s5 = sld [smem:[#allocation44_spill]] }
  0xce   :  { %s3687_s2 = scalar_lea.hbm %s4805_s5, 1024 }
  0xcf   :  { %p3688_p2 = scmp.ne.s32.totalorder %s4805_s5, %s3687_s2  ;;  %p3691_p3 = scmp.lt.u32.totalorder %s3687_s2, %s4805_s5 }
  0xd1   :  { %p3693_p4 = pnand %p3691_p3, %p3688_p2 }
  0xd3   :  { %3696 = shalt.err (!%p3693_p4)
}
  0xd4   :  { %s3697_s1 = scalar_lea.vmem %s89_s23, 1024  ;;  %p3702_p6 = scmp.lt.s32.totalorder %s89_s23, %s89_s23 }
  0xd5   :  { %p3698_p5 = scmp.ne.s32.totalorder %s89_s23, %s3697_s1  ;;  %p3703_p7 = scmp.lt.s32.totalorder %s3697_s1, %s3697_s1 }
  0xd7   :  { %p3704_p8 = por %p3703_p7, %p3702_p6 }
  0xd9   :  { %p3705_p9 = pnand %p3704_p8, %p3698_p5 }
  0xdb   :  { %3708 = shalt.err (!%p3705_p9)
}
  0xdc   :  { %94 = dma.hbm_to_vmem [thread:$0]  %s4805_s5, 1024, %s89_s23, [#allocation9], %s3884_s25, %s3884_s25, %s3885_s8  }
  0xdd   :  { %s4806_s4 = sld [smem:[#allocation46_spill]] }
  0xe3   :  { %s3709_s6 = scalar_lea.hbm %s4806_s4, 1024 }
  0xe4   :  { %p3710_p10 = scmp.ne.s32.totalorder %s4806_s4, %s3709_s6  ;;  %p3713_p11 = scmp.lt.u32.totalorder %s3709_s6, %s4806_s4 }
  0xe6   :  { %p3715_p12 = pnand %p3713_p11, %p3710_p10 }
  0xe8   :  { %3718 = shalt.err (!%p3715_p12)
}
  0xe9   :  { %s3719_s17 = scalar_lea.vmem %s111_s26, 1024  ;;  %p3724_p0 = scmp.lt.s32.totalorder %s111_s26, %s111_s26 }
  0xea   :  { %p3720_p13 = scmp.ne.s32.totalorder %s111_s26, %s3719_s17  ;;  %p3725_p1 = scmp.lt.s32.totalorder %s3719_s17, %s3719_s17 }
  0xec   :  { %p3726_p2 = por %p3725_p1, %p3724_p0 }
  0xee   :  { %p3727_p3 = pnand %p3726_p2, %p3720_p13 }
  0xf0   :  { %3730 = shalt.err (!%p3727_p3)
}
  0xf1   :  { %116 = dma.hbm_to_vmem [thread:$0]  %s4806_s4, 1024, %s111_s26, [#allocation12], %s3884_s25, %s3884_s25, %s3885_s8  }
  0xf2   :  { %s3896_s2 = smov [#allocation16]   ;;  %s3897_s27 = smov [#allocation19]  }
  0xf3   :  { %s134_s30 = sshll.u32 %s3896_s2, 4  ;;  %s156_s13 = sshll.u32 %s3897_s27, 4  ;;  %s135_s30 = int_to_ptr.vmem [resolvable:$true] %s134_s30  ;;  %s157_s13 = int_to_ptr.vmem [resolvable:$true] %s156_s13 }
  0xf4   :  { %s3731_s7 = scalar_lea.hbm %s4763_s10, 1024 }
  0xf5   :  { %p3732_p4 = scmp.ne.s32.totalorder %s4763_s10, %s3731_s7  ;;  %p3735_p5 = scmp.lt.u32.totalorder %s3731_s7, %s4763_s10 }
  0xf7   :  { %p3737_p6 = pnand %p3735_p5, %p3732_p4 }
  0xf9   :  { %3740 = shalt.err (!%p3737_p6)
}
  0xfa   :  { %s3741_s26 = scalar_lea.vmem %s135_s30, 1024  ;;  %p3746_p8 = scmp.lt.s32.totalorder %s135_s30, %s135_s30 }
  0xfb   :  { %p3742_p7 = scmp.ne.s32.totalorder %s135_s30, %s3741_s26  ;;  %p3747_p9 = scmp.lt.s32.totalorder %s3741_s26, %s3741_s26 }
  0xfd   :  { %p3748_p10 = por %p3747_p9, %p3746_p8 }
  0xff   :  { %p3749_p11 = pnand %p3748_p10, %p3742_p7 }
 0x101   :  { %3752 = shalt.err (!%p3749_p11)
}
 0x102   :  { %140 = dma.hbm_to_vmem [thread:$0]  %s4763_s10, 1024, %s135_s30, [#allocation15], %s3884_s25, %s3884_s25, %s3885_s8  }
 0x103   :  { %s3753_s29 = scalar_lea.hbm %s4765_s12, 1024 }
 0x104   :  { %p3754_p12 = scmp.ne.s32.totalorder %s4765_s12, %s3753_s29  ;;  %p3757_p13 = scmp.lt.u32.totalorder %s3753_s29, %s4765_s12 }
 0x106   :  { %p3759_p0 = pnand %p3757_p13, %p3754_p12 }
 0x108   :  { %3762 = shalt.err (!%p3759_p0)
}
 0x109   :  { %s3763_s27 = scalar_lea.vmem %s157_s13, 1024  ;;  %p3768_p2 = scmp.lt.s32.totalorder %s157_s13, %s157_s13 }
 0x10a   :  { %p3764_p1 = scmp.ne.s32.totalorder %s157_s13, %s3763_s27  ;;  %p3769_p3 = scmp.lt.s32.totalorder %s3763_s27, %s3763_s27 }
 0x10c   :  { %p3770_p4 = por %p3769_p3, %p3768_p2 }
 0x10e   :  { %p3771_p5 = pnand %p3770_p4, %p3764_p1 }
 0x110   :  { %3774 = shalt.err (!%p3771_p5)
}
 0x111   :  { %162 = dma.hbm_to_vmem [thread:$0]  %s4765_s12, 1024, %s157_s13, [#allocation18], %s3884_s25, %s3884_s25, %s3885_s8  }
 0x112   :  { %s3898_s0 = smov [#allocation22]   ;;  %s3899_s7 = smov [#allocation25]  }
 0x113   :  { %s181_s1 = sshll.u32 %s3898_s0, 4  ;;  %s202_s3 = sshll.u32 %s3899_s7, 4  ;;  %s182_s1 = int_to_ptr.vmem [resolvable:$true] %s181_s1  ;;  %s203_s3 = int_to_ptr.vmem [resolvable:$true] %s202_s3 }
 0x114   :  { %s3775_s6 = scalar_lea.hbm %s4768_s15, 64 }
 0x115   :  { %p3776_p6 = scmp.ne.s32.totalorder %s4768_s15, %s3775_s6  ;;  %p3779_p7 = scmp.lt.u32.totalorder %s3775_s6, %s4768_s15 }
 0x117   :  { %p3781_p8 = pnand %p3779_p7, %p3776_p6 }
 0x119   :  { %3784 = shalt.err (!%p3781_p8)
}
 0x11a   :  { %s3785_s12 = scalar_lea.vmem %s182_s1, 64  ;;  %p3790_p10 = scmp.lt.s32.totalorder %s182_s1, %s182_s1 }
 0x11b   :  { %p3786_p9 = scmp.ne.s32.totalorder %s182_s1, %s3785_s12  ;;  %p3791_p11 = scmp.lt.s32.totalorder %s3785_s12, %s3785_s12 }
 0x11d   :  { %p3792_p12 = por %p3791_p11, %p3790_p10 }
 0x11f   :  { %p3793_p13 = pnand %p3792_p12, %p3786_p9 }
 0x121   :  { %3796 = shalt.err (!%p3793_p13)
}
 0x122   :  { %184 = dma.hbm_to_vmem [thread:$0]  %s4768_s15, 64, %s182_s1, [#allocation21]  }
 0x123   :  { %s3797_s23 = scalar_lea.hbm %s4771_s18, 1024 }
 0x124   :  { %p3798_p0 = scmp.ne.s32.totalorder %s4771_s18, %s3797_s23  ;;  %p3801_p1 = scmp.lt.u32.totalorder %s3797_s23, %s4771_s18 }
 0x126   :  { %p3803_p2 = pnand %p3801_p1, %p3798_p0 }
 0x128   :  { %3806 = shalt.err (!%p3803_p2)
}
 0x129   :  { %s3807_s30 = scalar_lea.vmem %s203_s3, 1024  ;;  %p3812_p4 = scmp.lt.s32.totalorder %s203_s3, %s203_s3 }
 0x12a   :  { %p3808_p3 = scmp.ne.s32.totalorder %s203_s3, %s3807_s30  ;;  %p3813_p5 = scmp.lt.s32.totalorder %s3807_s30, %s3807_s30 }
 0x12c   :  { %p3814_p6 = por %p3813_p5, %p3812_p4 }
 0x12e   :  { %p3815_p7 = pnand %p3814_p6, %p3808_p3 }
 0x130   :  { %3818 = shalt.err (!%p3815_p7)
}
 0x131   :  { %208 = dma.hbm_to_vmem [thread:$0]  %s4771_s18, 1024, %s203_s3, [#allocation24], %s3884_s25, %s3884_s25, %s3885_s8  }
 0x132   :  { %s3900_s1 = smov [#allocation26]   ;;  %s3819_s6 = scalar_lea.hbm %s4773_s20, 1024 }
 0x133   :  { %s216_s7 = sshll.u32 %s3900_s1, 4  ;;  %p3820_p8 = scmp.ne.s32.totalorder %s4773_s20, %s3819_s6  ;;  %s217_s7 = int_to_ptr.vmem [resolvable:$true] %s216_s7 }
 0x134   :  { %p3823_p9 = scmp.lt.u32.totalorder %s3819_s6, %s4773_s20 }
 0x136   :  { %p3825_p10 = pnand %p3823_p9, %p3820_p8 }
 0x138   :  { %3828 = shalt.err (!%p3825_p10)
}
 0x139   :  { %s3829_s12 = scalar_lea.vmem %s217_s7, 1024  ;;  %p3834_p12 = scmp.lt.s32.totalorder %s217_s7, %s217_s7 }
 0x13a   :  { %p3830_p11 = scmp.ne.s32.totalorder %s217_s7, %s3829_s12  ;;  %p3835_p13 = scmp.lt.s32.totalorder %s3829_s12, %s3829_s12 }
 0x13c   :  { %p3836_p0 = por %p3835_p13, %p3834_p12 }
 0x13e   :  { %p3837_p1 = pnand %p3836_p0, %p3830_p11 }
 0x140   :  { %3840 = shalt.err (!%p3837_p1)
}
 0x141   :  { %222 = dma.hbm_to_vmem [thread:$0]  %s4773_s20, 1024, %s217_s7, [#allocation27], %s3884_s25, %s3884_s25, %s3885_s8  }
 0x142   :  { %3863 = dma.done.wait [#allocation3], 128  }
 0x143   :  { %3864 = vsyncadd [#allocation3], 4294967168 }
 0x144   :  { %3865 = dma.done.wait [#allocation6], 288  }
 0x145   :  { %3866 = vsyncadd [#allocation6], 4294967008 }
 0x146   :  { %3867 = dma.done.wait [#allocation9], 1056  }
 0x147   :  { %3868 = vsyncadd [#allocation9], 4294966240 }
 0x148   :  { %3869 = dma.done.wait [#allocation12], 1088  }
 0x149   :  { %3870 = vsyncadd [#allocation12], 4294966208 }
 0x14a   :  { %3871 = dma.done.wait [#allocation15], 1040  }
 0x14b   :  { %3872 = vsyncadd [#allocation15], 4294966256 }
 0x14c   :  { %3873 = dma.done.wait [#allocation18], 1088  }
 0x14d   :  { %3874 = vsyncadd [#allocation18], 4294966208 }
 0x14e   :  { %3875 = dma.done.wait [#allocation21], 80  }
 0x14f   :  { %3876 = vsyncadd [#allocation21], 4294967216 }
 0x150   :  { %3877 = dma.done.wait [#allocation24], 1056  }
 0x151   :  { %3878 = vsyncadd [#allocation24], 4294966240 }
 0x152   :  { %3879 = dma.done.wait [#allocation27], 1024  }
 0x153   :  { %3880 = vsyncadd [#allocation27], 4294966272  ;;  %vm281_vm0 = vcmask 523264   ;;  %v277_v0 = vld [vmem:[#allocation2] sm:$0xff]  ;;  %s4807_s8 = sld [smem:[#allocation42_spill]]  ;;  %v3901_v20 = vmov 0.0   ;;  %v296_v34 = vlaneseq }
 0x154   :  { %v282_v1 = vsel %vm281_vm0, %v277_v0, 0.0  ;;  %410 = vmatprep.mubr.f32.mxu1 %v3901_v20  ;;  %2901 = vmatprep.subr.mxu0 %v3901_v20  ;;  %v280_v38 = vld [vmem:[#allocation7] sm:$0x3]  ;;  %vm3902_vm1 = vmmov 0   ;;  %v322_v46 = vld [vmem:[#allocation8] sm:$0x3] }
 0x155   :  { %283 = vadd.xlane.f32.xlu0 %v282_v1  ;;  %v4300_v36 = vshrl.u32 %v296_v34, 7  ;;  %2903 = vmatprep.mubr.msk.f32.mxu0 %vm3902_vm1, %v3901_v20  ;;  %s3904_s23 = smov 64   ;;  %s3905_s5 = smov 32   ;;  %vm425_vm2 = vcmask 261120   ;;  %vm500_vm3 = vcmask 64512   ;;  %vm1198_vm5 = vcmask 130048  }
 0x156   :  { %s4808_s10 = sld [smem:[#allocation47_spill]]  ;;  %vm4430_vm4 = vmpackc.low %vm425_vm2, %vm425_vm2  ;;  %s4811_s2 = sld [smem:[#allocation48_spill]] }
 0x157   :  { %v4303_v37 = vsub.s32 0, %v4300_v36  ;;  %v4306_v39 = vsub.s32 1, %v4300_v36  ;;  %s4812_s30 = sld [smem:[#allocation49_spill]]  ;;  %s3908_s15 = smov [#allocation28]  }
 0x158   :  { %s2713_s0 = sshll.u32 %s3908_s15, 4  ;;  %s2714_s0 = int_to_ptr.vmem [resolvable:$true] %s2713_s0 }
 0x159   :  { %v307_v7 = vld [vmem:[%s4807_s8 + $0x8] sm:$0xff]  ;;  %v309_v8 = vld [vmem:[%s4807_s8 + $0x18] sm:$0xff]  ;;  %v306_v10 = vld [vmem:[%s4807_s8] sm:$0xff]  ;;  %v299_v40 = vrot.slane %v280_v38, %v4303_v37  ;;  %v304_v43 = vrot.slane %v280_v38, %v4306_v39  ;;  %v336_v47 = vrot.slane %v322_v46, %v4303_v37  ;;  %v340_v48 = vrot.slane %v322_v46, %v4306_v39  ;;  %s3841_s1 = scalar_lea.vmem %s2714_s0, 128  ;;  %p3846_p3 = scmp.lt.s32.totalorder %s2714_s0, %s2714_s0 }
 0x15a   :  { %v3197_v9 = vpack.c.bf16 %v309_v8, %v307_v7  ;;  %v308_v11 = vld [vmem:[%s4807_s8 + $0x10] sm:$0xff]  ;;  %v311_v13 = vld [vmem:[%s4807_s8 + $0x28] sm:$0xff]  ;;  %v313_v14 = vld [vmem:[%s4807_s8 + $0x38] sm:$0xff]  ;;  %v3906_v8 = vmov 0.0|0.0   ;;  %p3842_p2 = scmp.ne.s32.totalorder %s2714_s0, %s3841_s1  ;;  %p3847_p4 = scmp.lt.s32.totalorder %s3841_s1, %s3841_s1 }
 0x15b   :  { %v3199_v12 = vpack.c.bf16 %v308_v11, %v306_v10  ;;  %v310_v15 = vld [vmem:[%s4807_s8 + $0x20] sm:$0xff]  ;;  %v3201_v16 = vpack.c.bf16 %v313_v14, %v311_v13  ;;  %v312_v17 = vld [vmem:[%s4807_s8 + $0x30] sm:$0xff]  ;;  %v315_v18 = vld [vmem:[%s4807_s8 + $0x48] sm:$0xff] }
 0x15c   :  { %3198 = vmatprep.subr.bf16.mxu1 %v3197_v9  ;;  %v317_v19 = vld [vmem:[%s4807_s8 + $0x58] sm:$0xff]  ;;  %v3203_v21 = vpack.c.bf16 %v312_v17, %v310_v15  ;;  %v314_v23 = vld [vmem:[%s4807_s8 + $0x40] sm:$0xff]  ;;  %v316_v24 = vld [vmem:[%s4807_s8 + $0x50] sm:$0xff]  ;;  %p3848_p5 = por %p3847_p4, %p3846_p3 }
 0x15d   :  { %3200 = vmatpush1.bf16.msra.mxu1 %v3199_v12  ;;  %v3205_v22 = vpack.c.bf16 %v317_v19, %v315_v18  ;;  %v319_v25 = vld [vmem:[%s4807_s8 + $0x68] sm:$0xff]  ;;  %v321_v26 = vld [vmem:[%s4807_s8 + $0x78] sm:$0xff]  ;;  %v3207_v27 = vpack.c.bf16 %v316_v24, %v314_v23  ;;  %v318_v29 = vld [vmem:[%s4807_s8 + $0x60] sm:$0xff] }
 0x15e   :  { %3202 = vmatprep.subr.bf16.mxu1 %v3201_v16  ;;  %v3209_v28 = vpack.c.bf16 %v321_v26, %v319_v25  ;;  %v320_v30 = vld [vmem:[%s4807_s8 + $0x70] sm:$0xff]  ;;  %s3903_s8 = smov 96   ;;  %v323_v10 = vld [vmem:[#allocation10] sm:$0xff]  ;;  %v324_v11 = vld [vmem:[#allocation10 + $0x8] sm:$0xff]  ;;  %p3849_p6 = pnand %p3848_p5, %p3842_p2 }
 0x15f   :  { %v3211_v31 = vpack.c.bf16 %v320_v30, %v318_v29  ;;  %v3214_v13 = vpack.c.bf16 %v324_v11, %v323_v10  ;;  %v325_v15 = vld [vmem:[#allocation10 + $0x10] sm:$0xff]  ;;  %v326_v16 = vld [vmem:[#allocation10 + $0x18] sm:$0xff]  ;;  %v327_v19 = vld [vmem:[#allocation10 + $0x20] sm:$0xff] }
 0x160   :  { %v3217_v17 = vpack.c.bf16 %v326_v16, %v325_v15  ;;  %v330_v29 = vld [vmem:[#allocation10 + $0x38] sm:$0xff] }
 0x161   :  { %3204 = vmatpush1.bf16.msra.mxu1 %v3203_v21  ;;  %v328_v21 = vld [vmem:[#allocation10 + $0x28] sm:$0xff]  ;;  %v932_v46 = vld [vmem:[%s4808_s10 + $0x10] sm:$0xff]  ;;  %v945_v10 = vld [vmem:[%s4808_s10 + $0x78] sm:$0xff] }
 0x162   :  { %3206 = vmatprep.subr.bf16.mxu1 %v3205_v22  ;;  %v3220_v26 = vpack.c.bf16 %v328_v21, %v327_v19  ;;  %v279_v16 = vld [vmem:[#allocation5 + $0x8] sm:$0xff] }
 0x163   :  { %v928_v21 = vld [vmem:[#allocation13 + $0x30] sm:$0xff] }
 0x165   :  { %3208 = vmatpush1.bf16.msra.mxu1 %v3207_v27 }
 0x166   :  { %3210 = vmatprep.subr.bf16.mxu1 %v3209_v28  ;;  %v329_v28 = vld [vmem:[#allocation10 + $0x30] sm:$0xff] }
 0x167   :  { %v3223_v30 = vpack.c.bf16 %v330_v29, %v329_v28 }
 0x169   :  { %3212 = vmatpush1.bf16.msra.mxu1 %v3211_v31 }
 0x16a   :  { %2906 = vmatprep.subr.mxu1 %v3901_v20 }
 0x1e2   :  { %v284_v2 = vpop.xlane.xlu0 %283 }
 0x1e3   :  { %v286_v3 = vmul.f32 0.015625, %v284_v2 }
 0x1e5   :  { %v287_v4 = vsub.f32 %v277_v0, %v286_v3 }
 0x1e7   :  { %v288_v5 = vmul.f32 %v287_v4, %v287_v4 }
 0x1e9   :  { %v289_v6 = vsel %vm281_vm0, %v288_v5, 0.0 }
 0x1ea   :  { %290 = vadd.xlane.f32.xlu0 %v289_v6 }
 0x277   :  { %v291_v32 = vpop.xlane.xlu0 %290 }
 0x278   :  { %v292_v33 = vmul.f32 0.015625, %v291_v32 }
 0x27a   :  { %v293_v35 = vadd.f32 1e-12, %v292_v33  ;;  %v4353_v33 = vld [vmem:[#allocation11] sm:$0x7] }
 0x27b   :  { %v420_v34 = vrot.slane %v4353_v33, %v4303_v37  ;;  %v915_v28 = vrot.slane %v4353_v33, %v4306_v39 }
 0x27c   :  { %3445 = vrsqrt.f32 %v293_v35 }
 0x286   :  { %v3446_v41 = vpop.eup %3445 }
 0x287   :  { %v295_v42 = vmul.f32 %v3446_v41, %v287_v4 }
 0x289   :  { %v300_v44 = vmul.f32 %v299_v40, %v295_v42 }
 0x28b   :  { %v4310_v45 = vadd.f32 %v304_v43, %v300_v44  ;;  %v930_v43 = vld [vmem:[%s4808_s10] sm:$0xff]  ;;  %v931_v44 = vld [vmem:[%s4808_s10 + $0x8] sm:$0xff] }
 0x28d   :  { %2730 = vmatmul.mubr.msk.f32.vlgmr.msra.gmra.mrb[0].mxu1 %vm281_vm0, %v4310_v45  ;;  %v421_v35 = vadd.f32 %v420_v34, %v4310_v45  ;;  %v933_v45 = vld [vmem:[%s4808_s10 + $0x18] sm:$0xff] }
 0x28e   :  { %2908 = vmatprep.mubr.msk.f32.mxu1 %vm3902_vm1, %v3901_v20 }
 0x360   :  { %v412_v49 = vpop.f32.mrb[0].mxu1 }
 0x361   :  { %v413_v50 = vadd.f32 %v412_v49, %v336_v47  ;;  %v414_v51 = vpop.f32.mrb[1].mxu1  ;;  %v3237_v47 = vpack.c.bf16 %v931_v44, %v930_v43  ;;  %v934_v49 = vld [vmem:[%s4808_s10 + $0x20] sm:$0xff] }
 0x362   :  { %v415_v52 = vadd.f32 %v414_v51, %v340_v48  ;;  %v3241_v48 = vpack.c.bf16 %v933_v45, %v932_v46  ;;  %v4439_v46 = vld [vmem:[#allocation17] sm:$0xf] }
 0x363   :  { %659 = vrot.lane.b32.xlu0 %v413_v50, %s3903_s8  ;;  %423 = vrot.lane.b32.xlu1 %v413_v50, %s3904_s23 }
 0x364   :  { %2907 = vmatpush3.msra.mxu1 %v415_v52 }
 0x365   :  { %3213 = vmatprep.subr.bf16.mxu1 %v3906_v8 }
 0x367   :  { %661 = vrot.lane.b32.xlu1 %v413_v50, %s3905_s5 }
 0x3d5   :  { %v424_v53 = vpop.permute.xlu1 %423  ;;  %v660_v55 = vpop.permute.xlu0 %659 }
 0x3d6   :  { %2902 = vmatpush3.xpose.msk.msra.mxu0 %vm425_vm2, %v424_v53  ;;  %v937_v53 = vld [vmem:[%s4808_s10 + $0x38] sm:$0xff] }
 0x3d7   :  { %2922 = vmatprep.subr.mxu0 %v3901_v20 }
 0x3d9   :  { %2904 = vmatmul.mubr.msk.f32.vlgmr.msra.gmra.mrb[0].mxu0 %vm425_vm2, %v413_v50  ;;  %v662_v54 = vpop.permute.xlu1 %661  ;;  %v935_v50 = vld [vmem:[%s4808_s10 + $0x28] sm:$0xff] }
 0x3da   :  { %2923 = vmatpush3.xpose.msk.msra.mxu0 %vm425_vm2, %v662_v54  ;;  %2924 = vmatprep.mubr.msk.f32.mxu0 %vm3902_vm1, %v3901_v20  ;;  %v3245_v51 = vpack.c.bf16 %v935_v50, %v934_v49 }
 0x3db   :  { %3225 = vmatprep.subr.bf16.mxu0 %v3906_v8 }
 0x3dd   :  { %2925 = vmatmul.mubr.msk.f32.vlgmr.msra.gmra.mrb[2].mxu0 %vm425_vm2, %v660_v55  ;;  %v938_v55 = vld [vmem:[%s4808_s10 + $0x40] sm:$0xff] }
 0x3de   :  { %2959 = vmatprep.mubr.msk.f32.mxu0 %vm3902_vm1, %v3901_v20 }
 0x4ac   :  { %v496_v56 = vpop.f32.mrb[0].mxu0 }
 0x4ad   :  { %v2905_v57 = vpop.f32.mrb[1].mxu0  ;;  %v501_v58 = vsel %vm500_vm3, %v496_v56, -inf }
 0x4ae   :  { %502 = vmax.xlane.f32.xlu1 %v501_v58  ;;  %v940_v58 = vld [vmem:[%s4808_s10 + $0x50] sm:$0xff] }
 0x4b0   :  { %v733_v59 = vpop.f32.mrb[2].mxu0 }
 0x4b1   :  { %v2926_v60 = vpop.f32.mrb[3].mxu0  ;;  %v737_v61 = vsel %vm500_vm3, %v733_v59, -inf }
 0x4b2   :  { %738 = vmax.xlane.f32.xlu1 %v737_v61 }
 0x53b   :  { %v503_v62 = vpop.xlane.xlu1 %502 }
 0x53c   :  { %v504_v63 = vsub.f32 %v496_v56, %v503_v62  ;;  %v939_v56 = vld [vmem:[%s4808_s10 + $0x48] sm:$0xff] }
 0x53d   :  { %v3253_v57 = vpack.c.bf16 %v939_v56, %v938_v55 }
 0x53e   :  { %v505_v0 = vmul.f32 1.442695, %v504_v63 }
 0x53f   :  { %v739_v1 = vpop.xlane.xlu1 %738 }
 0x540   :  { %3447 = vpow2.f32 %v505_v0  ;;  %v740_v2 = vsub.f32 %v733_v59, %v739_v1  ;;  %v941_v59 = vld [vmem:[%s4808_s10 + $0x58] sm:$0xff] }
 0x541   :  { %v3257_v60 = vpack.c.bf16 %v941_v59, %v940_v58 }
 0x542   :  { %v741_v3 = vmul.f32 1.442695, %v740_v2  ;;  %v942_v2 = vld [vmem:[%s4808_s10 + $0x60] sm:$0xff] }
 0x544   :  { %3449 = vpow2.f32 %v741_v3  ;;  %v943_v3 = vld [vmem:[%s4808_s10 + $0x68] sm:$0xff] }
 0x54a   :  { %v3448_v4 = vpop.eup %3447 }
 0x54b   :  { %v507_v5 = vsel %vm500_vm3, %v3448_v4, 0.0 }
 0x54c   :  { %508 = vadd.xlane.f32.xlu0 %v507_v5  ;;  %v922_v5 = vld [vmem:[#allocation13] sm:$0xff] }
 0x54e   :  { %v3450_v6 = vpop.eup %3449 }
 0x54f   :  { %v743_v7 = vsel %vm500_vm3, %v3450_v6, 0.0 }
 0x550   :  { %744 = vadd.xlane.f32.xlu1 %v743_v7  ;;  %v944_v7 = vld [vmem:[%s4808_s10 + $0x70] sm:$0xff] }
 0x551   :  { %v3265_v11 = vpack.c.bf16 %v945_v10, %v944_v7 }
 0x561   :  { %749 = vrot.lane.b32.xlu1 %v415_v52, %s3903_s8  ;;  %v936_v52 = vld [vmem:[%s4808_s10 + $0x30] sm:$0xff] }
 0x562   :  { %v3249_v54 = vpack.c.bf16 %v937_v53, %v936_v52 }
 0x5d9   :  { %v509_v9 = vpop.xlane.xlu0 %508 }
 0x5da   :  { %3451 = vrcp.f32 %v509_v9 }
 0x5dd   :  { %v745_v18 = vpop.xlane.xlu1 %744 }
 0x5de   :  { %3453 = vrcp.f32 %v745_v18  ;;  %v927_v18 = vld [vmem:[#allocation13 + $0x28] sm:$0xff] }
 0x5e1   :  { %v750_v24 = vpop.permute.xlu1 %749 }
 0x5e4   :  { %v3452_v12 = vpop.eup %3451 }
 0x5e5   :  { %v511_v14 = vmul.f32 %v3452_v12, %v3448_v4  ;;  %v3261_v4 = vpack.c.bf16 %v943_v3, %v942_v2  ;;  %v924_v12 = vld [vmem:[#allocation13 + $0x10] sm:$0xff] }
 0x5e7   :  { %2909 = vmatmul.mubr.msk.f32.vlgmr.msra.gmra.mrb[2].mxu1 %vm500_vm3, %v511_v14  ;;  %v278_v14 = vld [vmem:[#allocation5] sm:$0xff] }
 0x5e8   :  { %3215 = vmatpush3.bf16.msra.mxu1 %v3214_v13  ;;  %2919 = vmatprep.mubr.msk.f32.mxu1 %vm3902_vm1, %v3901_v20  ;;  %v3454_v22 = vpop.eup %3453  ;;  %v925_v13 = vld [vmem:[#allocation13 + $0x18] sm:$0xff] }
 0x5e9   :  { %3216 = vmatprep.subr.bf16.mxu1 %v3906_v8  ;;  %v747_v27 = vmul.f32 %v3454_v22, %v3450_v6  ;;  %v923_v6 = vld [vmem:[#allocation13 + $0x8] sm:$0xff]  ;;  %v3229_v15 = vpack.c.bf16 %v925_v13, %v924_v12  ;;  %v929_v22 = vld [vmem:[#allocation13 + $0x38] sm:$0xff] }
 0x5ea   :  { %v3226_v9 = vpack.c.bf16 %v923_v6, %v922_v5  ;;  %v950_v5 = vld [vmem:[#allocation16 + $0x18] sm:$0xff] }
 0x5ec   :  { %3218 = vmatpush3.bf16.msra.mxu1 %v3217_v17  ;;  %3227 = vmatpush3.bf16.msra.mxu0 %v3226_v9  ;;  %v926_v17 = vld [vmem:[#allocation13 + $0x20] sm:$0xff] }
 0x5ed   :  { %2927 = vmatprep.subr.mxu1 %v3901_v20  ;;  %3228 = vmatprep.subr.bf16.mxu0 %v3906_v8  ;;  %v3232_v19 = vpack.c.bf16 %v927_v18, %v926_v17 }
 0x5f0   :  { %3230 = vmatpush3.bf16.msra.mxu0 %v3229_v15 }
 0x5f1   :  { %3231 = vmatprep.subr.bf16.mxu0 %v3906_v8 }
 0x5f4   :  { %3233 = vmatpush3.bf16.msra.mxu0 %v3232_v19 }
 0x5f5   :  { %3234 = vmatprep.subr.bf16.mxu0 %v3906_v8 }
 0x6ba   :  { %v581_v23 = vpop.f32.mrb[2].mxu1 }
 0x6bb   :  { %v2910_v25 = vpop.f32.mrb[3].mxu1  ;;  %2920 = vmatmul.mubr.msk.f32.vlgmr.msra.gmra.mrb[4].mxu1 %vm425_vm2, %v581_v23  ;;  %v3235_v23 = vpack.c.bf16 %v929_v22, %v928_v21 }
 0x6bc   :  { %2928 = vmatpush3.msra.mxu1 %v750_v24  ;;  %2929 = vmatprep.mubr.msk.f32.mxu1 %vm3902_vm1, %v3901_v20 }
 0x6bd   :  { %3219 = vmatprep.subr.bf16.mxu1 %v3906_v8  ;;  %3236 = vmatpush3.bf16.msra.mxu0 %v3235_v23 }
 0x6be   :  { %3269 = vmatprep.subr.bf16.mxu0 %v3906_v8 }
 0x6bf   :  { %2930 = vmatmul.mubr.msk.f32.vlgmr.msra.gmra.mrb[6].mxu1 %vm500_vm3, %v747_v27  ;;  %v4416_v27 = vsub.s32 2, %v4300_v36 }
 0x6c0   :  { %3221 = vmatpush3.bf16.msra.mxu1 %v3220_v26  ;;  %2940 = vmatprep.mubr.msk.f32.mxu1 %vm3902_vm1, %v3901_v20 }
 0x6c1   :  { %3222 = vmatprep.subr.bf16.mxu1 %v3906_v8 }
 0x6c4   :  { %3224 = vmatpush3.bf16.msra.mxu1 %v3223_v30  ;;  %v920_v30 = vrot.slane %v4353_v33, %v4416_v27 }
 0x6c5   :  { %3238 = vmatprep.subr.bf16.mxu1 %v3237_v47 }
 0x792   :  { %v821_v31 = vpop.f32.mrb[6].mxu1 }
 0x793   :  { %v2931_v32 = vpop.f32.mrb[7].mxu1  ;;  %2941 = vmatmul.mubr.msk.f32.vlgmr.msra.gmra.mrb[4].mxu1 %vm425_vm2, %v821_v31 }
 0x794   :  { %3240 = vmatpush3.bf16.msra.mxu1 %v3237_v47  ;;  %2994 = vmatprep.mubr.f32.mxu1 %v278_v14  ;;  %v959_v47 = vrot.slane %v4439_v46, %v4303_v37 }
 0x795   :  { %3242 = vmatprep.subr.bf16.mxu1 %v3241_v48 }
 0x798   :  { %3244 = vmatpush3.bf16.msra.mxu1 %v3241_v48 }
 0x799   :  { %3246 = vmatprep.subr.bf16.mxu1 %v3245_v51 }
 0x79c   :  { %3248 = vmatpush3.bf16.msra.mxu1 %v3245_v51 }
 0x79d   :  { %3250 = vmatprep.subr.bf16.mxu1 %v3249_v54 }
 0x7a0   :  { %3252 = vmatpush3.bf16.msra.mxu1 %v3249_v54 }
 0x7a1   :  { %3254 = vmatprep.subr.bf16.mxu1 %v3253_v57 }
 0x7a4   :  { %3256 = vmatpush3.bf16.msra.mxu1 %v3253_v57 }
 0x7a5   :  { %3258 = vmatprep.subr.bf16.mxu1 %v3257_v60 }
 0x7a8   :  { %3260 = vmatpush3.bf16.msra.mxu1 %v3257_v60 }
 0x7a9   :  { %3262 = vmatprep.subr.bf16.mxu1 %v3261_v4 }
 0x7ac   :  { %3264 = vmatpush3.bf16.msra.mxu1 %v3261_v4  ;;  %v949_v4 = vld [vmem:[#allocation16 + $0x10] sm:$0xff] }
 0x7ad   :  { %3266 = vmatprep.subr.bf16.mxu1 %v3265_v11  ;;  %v3280_v6 = vpack.c.bf16 %v950_v5, %v949_v4 }
 0x7b0   :  { %3268 = vmatpush3.bf16.msra.mxu1 %v3265_v11 }
 0x7b1   :  { %3286 = vmatprep.subr.bf16.mxu1 %v3906_v8 }
 0x7b3   :  { %2995 = vmatmul.mubr.f32.vlgmr.msra.gmra.mrb[8].mxu1 %v279_v16 }
 0x7b4   :  { %3033 = vmatprep.mubr.msk.f32.mxu1 %vm3902_vm1, %v3901_v20 }
 0x866   :  { %v894_v38 = vpop.f32.mrb[4].mxu1 }
 0x867   :  { %v3395_v40 = vadd.f32 %v894_v38, %v421_v35  ;;  %v2942_v41 = vpop.f32.mrb[5].mxu1  ;;  %v2740_v35 = vld [vmem:[#allocation14] ss:$0 sm:$0xff] }
 0x869   :  { %v899_v42 = vsel %vm281_vm0, %v3395_v40, 0.0 }
 0x86a   :  { %900 = vadd.xlane.f32.xlu0 %v899_v42 }
 0x886   :  { %v2996_v38 = vpop.f32.mrb[8].mxu1 }
 0x887   :  { %v1105_v41 = vpop.f32.mrb[9].mxu1 }
 0x888   :  { %v1106_v42 = vadd.f32 %v2740_v35, %v1105_v41 }
 0x8f7   :  { %v901_v61 = vpop.xlane.xlu0 %900 }
 0x8f8   :  { %v902_v62 = vmul.f32 0.015625, %v901_v61 }
 0x8fa   :  { %v903_v63 = vsub.f32 %v3395_v40, %v902_v62  ;;  %v1111_v40 = vadd.f32 %v2996_v38, %v2740_v35 }
 0x8fc   :  { %v904_v0 = vmul.f32 %v903_v63, %v903_v63  ;;  %v3270_v33 = vpack.c.bf16 %v1111_v40, %v1106_v42  ;;  %v4434_v44 = vpack.i.bf16 %v1111_v40, %v1106_v42 }
 0x8fe   :  { %v905_v1 = vsel %vm281_vm0, %v904_v0, 0.0  ;;  %v948_v0 = vld [vmem:[#allocation16 + $0x8] sm:$0xff] }
 0x8ff   :  { %906 = vadd.xlane.f32.xlu0 %v905_v1 }
 0x98c   :  { %v907_v24 = vpop.xlane.xlu0 %906 }
 0x98d   :  { %v908_v25 = vmul.f32 0.015625, %v907_v24  ;;  %v951_v24 = vld [vmem:[#allocation16 + $0x20] sm:$0xff] }
 0x98f   :  { %v909_v26 = vadd.f32 1e-12, %v908_v25  ;;  %v952_v25 = vld [vmem:[#allocation16 + $0x28] sm:$0xff] }
 0x991   :  { %3455 = vrsqrt.f32 %v909_v26  ;;  %v953_v26 = vld [vmem:[#allocation16 + $0x30] sm:$0xff] }
 0x99b   :  { %v3456_v29 = vpop.eup %3455 }
 0x99c   :  { %v911_v31 = vmul.f32 %v3456_v29, %v903_v63  ;;  %v947_v63 = vld [vmem:[#allocation16] sm:$0xff]  ;;  %v954_v29 = vld [vmem:[#allocation16 + $0x38] sm:$0xff] }
 0x99d   :  { %v3277_v2 = vpack.c.bf16 %v948_v0, %v947_v63  ;;  %v1638_v0 = vld [vmem:[#allocation19 + $0x30] sm:$0xff] }
 0x99e   :  { %v916_v32 = vmul.f32 %v915_v28, %v911_v31  ;;  %v3290_v28 = vpack.c.bf16 %v952_v25, %v951_v24  ;;  %v1649_v25 = vld [vmem:[%s4767_s14 + $0x40] sm:$0xff] }
 0x9a0   :  { %v4422_v34 = vadd.f32 %v920_v30, %v916_v32  ;;  %v3293_v30 = vpack.c.bf16 %v954_v29, %v953_v26  ;;  %v1650_v26 = vld [vmem:[%s4767_s14 + $0x48] sm:$0xff]  ;;  %v1651_v29 = vld [vmem:[%s4767_s14 + $0x50] sm:$0xff] }
 0x9a2   :  { %2960 = vmatmul.mubr.msk.f32.vlgmr.msra.gmra.mrb[4].mxu0 %vm281_vm0, %v4422_v34 }
 0x9a3   :  { %3001 = vmatprep.mubr.msk.f32.mxu0 %vm3902_vm1, %v3901_v20  ;;  %3272 = vmatpush3.bf16.xpose.msk.msra.mxu0 %vm4430_vm4, %v3270_v33 }
 0x9a4   :  { %3273 = vmatprep.subr.bf16.mxu0 %v3906_v8 }
 0xa75   :  { %v1029_v45 = vpop.f32.mrb[4].mxu0 }
 0xa76   :  { %v1030_v48 = vadd.f32 %v1029_v45, %v959_v47  ;;  %v2961_v49 = vpop.f32.mrb[5].mxu0 }
 0xa78   :  { %3002 = vmatmul.mubr.msk.f32.vlgmr.msra.gmra.mrb[6].mxu0 %vm425_vm2, %v1030_v48 }
 0xa79   :  { %3008 = vmatprep.mubr.msk.f32.mxu0 %vm3902_vm1, %v3901_v20 }
 0xb4b   :  { %v1194_v50 = vpop.f32.mrb[6].mxu0 }
 0xb4c   :  { %v3003_v51 = vpop.f32.mrb[7].mxu0  ;;  %v1199_v52 = vsel %vm1198_vm5, %v1194_v50, -inf }
 0xb4d   :  { %1200 = vmax.xlane.f32.xlu0 %v1199_v52 }
 0xb63   :  { %3431 = vrot.lane.b32.xlu0 %v4434_v44, %s3904_s23 }
 0xb67   :  { %3436 = vrot.lane.b32.xlu0 %v4434_v44, %s3903_s8 }
 0xb6b   :  { %1363 = vrot.lane.b32.xlu0 %v1030_v48, %s3903_s8 }
 0xbda   :  { %v1201_v53 = vpop.xlane.xlu0 %1200 }
 0xbdb   :  { %v1202_v54 = vsub.f32 %v1194_v50, %v1201_v53 }
 0xbdd   :  { %v1203_v55 = vmul.f32 1.442695, %v1202_v54 }
 0xbde   :  { %v3432_v56 = vpop.permute.xlu0 %3431 }
 0xbdf   :  { %3457 = vpow2.f32 %v1203_v55  ;;  %v3434_v57 = vunpack.i.h.bf16 %v3432_v56  ;;  %v3433_v58 = vunpack.i.l.bf16 %v3432_v56  ;;  %v1632_v56 = vld [vmem:[#allocation19] sm:$0xff] }
 0xbe1   :  { %v3274_v59 = vpack.c.bf16 %v3434_v57, %v3433_v58  ;;  %v1633_v57 = vld [vmem:[#allocation19 + $0x8] sm:$0xff] }
 0xbe2   :  { %v3437_v7 = vpop.permute.xlu0 %3436  ;;  %v3296_v58 = vpack.c.bf16 %v1633_v57, %v1632_v56 }
 0xbe3   :  { %3275 = vmatpush3.bf16.msra.mxu0 %v3274_v59  ;;  %v3439_v9 = vunpack.i.h.bf16 %v3437_v7  ;;  %v3438_v10 = vunpack.i.l.bf16 %v3437_v7  ;;  %v1635_v59 = vld [vmem:[#allocation19 + $0x18] sm:$0xff]  ;;  %v1625_v7 = vrot.slane %v4439_v46, %v4416_v27 }
 0xbe4   :  { %3276 = vmatprep.subr.bf16.mxu0 %v3906_v8 }
 0xbe5   :  { %v3283_v11 = vpack.c.bf16 %v3439_v9, %v3438_v10 }
 0xbe6   :  { %v1364_v14 = vpop.permute.xlu0 %1363 }
 0xbe9   :  { %v3458_v60 = vpop.eup %3457 }
 0xbea   :  { %v1205_v61 = vsel %vm1198_vm5, %v3458_v60, 0.0 }
 0xbeb   :  { %1206 = vadd.xlane.f32.xlu1 %v1205_v61  ;;  %v1636_v61 = vld [vmem:[#allocation19 + $0x20] sm:$0xff] }
 0xc78   :  { %v1207_v62 = vpop.xlane.xlu1 %1206 }
 0xc79   :  { %3459 = vrcp.f32 %v1207_v62  ;;  %v1637_v62 = vld [vmem:[#allocation19 + $0x28] sm:$0xff] }
 0xc7a   :  { %v3302_v63 = vpack.c.bf16 %v1637_v62, %v1636_v61 }
 0xc83   :  { %v3460_v1 = vpop.eup %3459 }
 0xc84   :  { %v1209_v3 = vmul.f32 %v3460_v1, %v3458_v60  ;;  %v1639_v1 = vld [vmem:[#allocation19 + $0x38] sm:$0xff] }
 0xc86   :  { %3009 = vmatmul.mubr.msk.f32.vlgmr.msra.gmra.mrb[8].mxu0 %vm1198_vm5, %v1209_v3 }
 0xc87   :  { %3278 = vmatpush3.bf16.msra.mxu0 %v3277_v2  ;;  %3019 = vmatprep.mubr.msk.f32.mxu0 %vm3902_vm1, %v3901_v20  ;;  %v3305_v2 = vpack.c.bf16 %v1639_v1, %v1638_v0 }
 0xc88   :  { %3279 = vmatprep.subr.bf16.mxu0 %v3906_v8 }
 0xc8b   :  { %3281 = vmatpush3.bf16.msra.mxu0 %v3280_v6  ;;  %v1629_v6 = vsub.s32 3, %v4300_v36  ;;  %v1642_v36 = vld [vmem:[%s4767_s14 + $0x8] sm:$0xff] }
 0xc8c   :  { %3282 = vmatprep.subr.bf16.mxu0 %v3906_v8 }
 0xc8d   :  { %v1630_v10 = vrot.slane %v4439_v46, %v1629_v6 }
 0xd59   :  { %v1285_v12 = vpop.f32.mrb[8].mxu0 }
 0xd5a   :  { %v3010_v13 = vpop.f32.mrb[9].mxu0  ;;  %3020 = vmatmul.mubr.msk.f32.vlgmr.msra.gmra.mrb[10].mxu0 %vm425_vm2, %v1285_v12 }
 0xd5b   :  { %3285 = vmatpush3.bf16.xpose.msk.msra.mxu0 %vm4430_vm4, %v3283_v11  ;;  %3026 = vmatprep.mubr.msk.f32.mxu0 %vm3902_vm1, %v3901_v20 }
 0xd5c   :  { %3289 = vmatprep.subr.bf16.mxu0 %v3906_v8 }
 0xd62   :  { %3027 = vmatmul.mubr.msk.f32.vlgmr.msra.gmra.mrb[12].mxu0 %vm425_vm2, %v1364_v14  ;;  %v1641_v14 = vld [vmem:[%s4767_s14] sm:$0xff] }
 0xd63   :  { %3044 = vmatprep.mubr.msk.f32.mxu0 %vm3902_vm1, %v3901_v20  ;;  %3291 = vmatpush3.bf16.msra.mxu0 %v3290_v28  ;;  %v3320_v28 = vpack.c.bf16 %v1650_v26, %v1649_v25  ;;  %v1867_v26 = vld [vmem:[%s4769_s16 + $0x28] sm:$0xff] }
 0xd64   :  { %3292 = vmatprep.subr.bf16.mxu0 %v3906_v8 }
 0xd67   :  { %3294 = vmatpush3.bf16.msra.mxu0 %v3293_v30  ;;  %v1652_v30 = vld [vmem:[%s4767_s14 + $0x58] sm:$0xff] }
 0xd68   :  { %3307 = vmatprep.subr.bf16.mxu0 %v3906_v8 }
 0xe35   :  { %v1441_v15 = vpop.f32.mrb[12].mxu0 }
 0xe36   :  { %v3028_v16 = vpop.f32.mrb[13].mxu0  ;;  %v1445_v17 = vsel %vm1198_vm5, %v1441_v15, -inf }
 0xe37   :  { %1446 = vmax.xlane.f32.xlu0 %v1445_v17  ;;  %v1644_v16 = vld [vmem:[%s4767_s14 + $0x18] sm:$0xff] }
 0xec4   :  { %v1447_v18 = vpop.xlane.xlu0 %1446 }
 0xec5   :  { %v1448_v19 = vsub.f32 %v1441_v15, %v1447_v18  ;;  %v3308_v15 = vpack.c.bf16 %v1642_v36, %v1641_v14  ;;  %v1645_v18 = vld [vmem:[%s4767_s14 + $0x20] sm:$0xff] }
 0xec7   :  { %v1449_v21 = vmul.f32 1.442695, %v1448_v19  ;;  %v1646_v19 = vld [vmem:[%s4767_s14 + $0x28] sm:$0xff] }
 0xec9   :  { %3461 = vpow2.f32 %v1449_v21  ;;  %v3314_v21 = vpack.c.bf16 %v1646_v19, %v1645_v18 }
 0xed3   :  { %v3462_v22 = vpop.eup %3461 }
 0xed4   :  { %v1451_v23 = vsel %vm1198_vm5, %v3462_v22, 0.0 }
 0xed5   :  { %1452 = vadd.xlane.f32.xlu1 %v1451_v23  ;;  %v1648_v23 = vld [vmem:[%s4767_s14 + $0x38] sm:$0xff] }
 0xee6   :  { %3441 = vrot.lane.b32.xlu1 %v4434_v44, %s3905_s5  ;;  %v1117_v44 = vrot.slane %v4439_v46, %v4306_v39  ;;  %v1643_v46 = vld [vmem:[%s4767_s14 + $0x10] sm:$0xff] }
 0xee7   :  { %v3311_v17 = vpack.c.bf16 %v1644_v16, %v1643_v46 }
 0xee8   :  { %v1118_v47 = vadd.f32 %v1117_v44, %v4422_v34  ;;  %v1634_v34 = vld [vmem:[#allocation19 + $0x10] sm:$0xff] }
 0xee9   :  { %v3299_v60 = vpack.c.bf16 %v1635_v59, %v1634_v34 }
 0xf62   :  { %v1453_v31 = vpop.xlane.xlu1 %1452 }
 0xf63   :  { %3463 = vrcp.f32 %v1453_v31  ;;  %v3323_v31 = vpack.c.bf16 %v1652_v30, %v1651_v29  ;;  %v1866_v30 = vld [vmem:[%s4769_s16 + $0x20] sm:$0xff] }
 0xf66   :  { %v3442_v32 = vpop.permute.xlu1 %3441 }
 0xf67   :  { %v3444_v35 = vunpack.i.h.bf16 %v3442_v32  ;;  %v3443_v38 = vunpack.i.l.bf16 %v3442_v32  ;;  %v1653_v32 = vld [vmem:[%s4767_s14 + $0x60] sm:$0xff] }
 0xf69   :  { %v3287_v40 = vpack.c.bf16 %v3444_v35, %v3443_v38  ;;  %v1654_v35 = vld [vmem:[%s4767_s14 + $0x68] sm:$0xff] }
 0xf6a   :  { %v3326_v38 = vpack.c.bf16 %v1654_v35, %v1653_v32  ;;  %v1871_v35 = vld [vmem:[%s4769_s16 + $0x48] sm:$0xff] }
 0xf6b   :  { %3288 = vmatpush3.bf16.msra.mxu1 %v3287_v40  ;;  %v1655_v40 = vld [vmem:[%s4767_s14 + $0x70] sm:$0xff] }
 0xf6c   :  { %3295 = vmatprep.subr.bf16.mxu1 %v3906_v8 }
 0xf6d   :  { %v3464_v41 = vpop.eup %3463 }
 0xf6e   :  { %v1455_v42 = vmul.f32 %v3464_v41, %v3462_v22  ;;  %v1647_v22 = vld [vmem:[%s4767_s14 + $0x30] sm:$0xff]  ;;  %v1656_v41 = vld [vmem:[%s4767_s14 + $0x78] sm:$0xff] }
 0xf6f   :  { %v3317_v24 = vpack.c.bf16 %v1648_v23, %v1647_v22  ;;  %v1865_v22 = vld [vmem:[%s4769_s16 + $0x18] sm:$0xff] }
 0xf70   :  { %3034 = vmatmul.mubr.msk.f32.vlgmr.msra.gmra.mrb[10].mxu1 %vm1198_vm5, %v1455_v42  ;;  %v3329_v42 = vpack.c.bf16 %v1656_v41, %v1655_v40  ;;  %v1870_v41 = vld [vmem:[%s4769_s16 + $0x40] sm:$0xff] }
 0xf71   :  { %3063 = vmatprep.mubr.msk.f32.mxu1 %vm3902_vm1, %v3901_v20  ;;  %3297 = vmatpush3.bf16.msra.mxu1 %v3296_v58 }
 0xf72   :  { %3298 = vmatprep.subr.bf16.mxu1 %v3906_v8 }
 0xf75   :  { %3300 = vmatpush3.bf16.msra.mxu1 %v3299_v60 }
 0xf76   :  { %3301 = vmatprep.subr.bf16.mxu1 %v3906_v8 }
 0xf79   :  { %3303 = vmatpush3.bf16.msra.mxu1 %v3302_v63 }
 0xf7a   :  { %3304 = vmatprep.subr.bf16.mxu1 %v3906_v8 }
 0xf7d   :  { %3306 = vmatpush3.bf16.msra.mxu1 %v3305_v2  ;;  %v3907_v2 = vmov -1.0  }
0x1043   :  { %v1531_v43 = vpop.f32.mrb[10].mxu1 }
0x1044   :  { %v3035_v33 = vpop.f32.mrb[11].mxu1  ;;  %3045 = vmatmul.mubr.msk.f32.vlgmr.msra.gmra.mrb[10].mxu0 %vm425_vm2, %v1531_v43  ;;  %v2751_v43 = vld [vmem:[#allocation20] ss:$0 sm:$0xff] }
0x1045   :  { %3098 = vmatprep.mubr.msk.f32.mxu0 %vm3902_vm1, %v3901_v20  ;;  %3309 = vmatpush3.bf16.msra.mxu0 %v3308_v15 }
0x1046   :  { %3310 = vmatprep.subr.bf16.mxu0 %v3906_v8 }
0x1049   :  { %3312 = vmatpush3.bf16.msra.mxu0 %v3311_v17 }
0x104a   :  { %3313 = vmatprep.subr.bf16.mxu0 %v3906_v8 }
0x104d   :  { %3315 = vmatpush3.bf16.msra.mxu0 %v3314_v21  ;;  %v1863_v21 = vld [vmem:[%s4769_s16 + $0x8] sm:$0xff] }
0x104e   :  { %3316 = vmatprep.subr.bf16.mxu0 %v3906_v8  ;;  %v3331_v23 = vpack.c.bf16 %v1865_v22, %v1863_v21 }
0x1050   :  { %3332 = vmatprep.subr.bf16.mxu1 %v3331_v23 }
0x1051   :  { %3318 = vmatpush3.bf16.msra.mxu0 %v3317_v24  ;;  %v1864_v24 = vld [vmem:[%s4769_s16 + $0x10] sm:$0xff] }
0x1052   :  { %3319 = vmatprep.subr.bf16.mxu0 %v3906_v8 }
0x1055   :  { %3321 = vmatpush3.bf16.msra.mxu0 %v3320_v28  ;;  %v1869_v28 = vld [vmem:[%s4769_s16 + $0x38] sm:$0xff] }
0x1056   :  { %3322 = vmatprep.subr.bf16.mxu0 %v3906_v8  ;;  %v3335_v29 = vpack.c.bf16 %v1869_v28, %v1867_v26 }
0x1059   :  { %3324 = vmatpush3.bf16.msra.mxu0 %v3323_v31  ;;  %v1868_v31 = vld [vmem:[%s4769_s16 + $0x30] sm:$0xff] }
0x105a   :  { %3325 = vmatprep.subr.bf16.mxu0 %v3906_v8  ;;  %v3337_v32 = vpack.c.bf16 %v1868_v31, %v1866_v30 }
0x105d   :  { %3327 = vmatpush3.bf16.msra.mxu0 %v3326_v38  ;;  %v1873_v38 = vld [vmem:[%s4769_s16 + $0x58] sm:$0xff] }
0x105e   :  { %3328 = vmatprep.subr.bf16.mxu0 %v3906_v8  ;;  %v3339_v40 = vpack.c.bf16 %v1873_v38, %v1871_v35  ;;  %v1883_v38 = vld [vmem:[#allocation25 + $0x20] sm:$0xff] }
0x1061   :  { %3330 = vmatpush3.bf16.msra.mxu0 %v3329_v42  ;;  %v1872_v42 = vld [vmem:[%s4769_s16 + $0x50] sm:$0xff] }
0x1062   :  { %3347 = vmatprep.subr.bf16.mxu0 %v3906_v8 }
0x1117   :  { %v1604_v45 = vpop.f32.mrb[10].mxu0 }
0x1118   :  { %v3396_v48 = vadd.f32 %v1604_v45, %v1118_v47  ;;  %v3046_v49 = vpop.f32.mrb[11].mxu0 }
0x111a   :  { %v1609_v50 = vsel %vm281_vm0, %v3396_v48, 0.0 }
0x111b   :  { %1610 = vadd.xlane.f32.xlu1 %v1609_v50 }
0x11a8   :  { %v1611_v51 = vpop.xlane.xlu1 %1610 }
0x11a9   :  { %v1612_v52 = vmul.f32 0.015625, %v1611_v51 }
0x11ab   :  { %v1613_v53 = vsub.f32 %v3396_v48, %v1612_v52 }
0x11ad   :  { %v1614_v54 = vmul.f32 %v1613_v53, %v1613_v53 }
0x11af   :  { %v1615_v55 = vsel %vm281_vm0, %v1614_v54, 0.0 }
0x11b0   :  { %1616 = vadd.xlane.f32.xlu0 %v1615_v55 }
0x123d   :  { %v1617_v3 = vpop.xlane.xlu0 %1616 }
0x123e   :  { %v1618_v4 = vmul.f32 0.015625, %v1617_v3 }
0x1240   :  { %v1619_v5 = vadd.f32 1e-12, %v1618_v4 }
0x1242   :  { %3465 = vrsqrt.f32 %v1619_v5 }
0x124c   :  { %v3466_v9 = vpop.eup %3465 }
0x124d   :  { %v1621_v11 = vmul.f32 %v3466_v9, %v1613_v53  ;;  %v1657_v9 = vld [vmem:[#allocation22] sm:$0x7] }
0x124f   :  { %v1626_v12 = vmul.f32 %v1625_v7, %v1621_v11 }
0x1251   :  { %v4493_v13 = vadd.f32 %v1630_v10, %v1626_v12  ;;  %v1767_v10 = vrot.slane %v1657_v9, %v4303_v37 }
0x1253   :  { %3064 = vmatmul.mubr.msk.f32.vlgmr.msra.gmra.mrb[12].mxu1 %vm281_vm0, %v4493_v13 }
0x1254   :  { %1966 = vmatprep.mubr.f32.mxu1 %v3901_v20 }
0x1326   :  { %v1733_v33 = vpop.f32.mrb[12].mxu1 }
0x1327   :  { %v1734_v44 = vadd.f32 %v2751_v43, %v1733_v33  ;;  %v3065_v47 = vpop.f32.mrb[13].mxu1  ;;  %v3341_v43 = vpack.c.bf16 %v1872_v42, %v1870_v41  ;;  %v1875_v33 = vld [vmem:[%s4769_s16 + $0x68] sm:$0xff]  ;;  %v1885_v41 = vld [vmem:[#allocation25 + $0x30] sm:$0xff] }
0x1329   :  { %v1738_v45 = vmul.f32 0.70710677, %v1734_v44  ;;  %v1737_v5 = vmul.f32 0.5, %v1734_v44  ;;  %v1877_v44 = vld [vmem:[%s4769_s16 + $0x78] sm:$0xff] }
0x132a   :  { %v3343_v47 = vpack.c.bf16 %v1877_v44, %v1875_v33 }
0x132b   :  { %v1741_v48 = vand.u32 2147483647, %v1738_v45  ;;  %vm1739_vm6 = vcmp.ge.f32.partialorder %v1738_v45, 0.0  ;;  %v1874_v45 = vld [vmem:[%s4769_s16 + $0x60] sm:$0xff] }
0x132c   :  { %v1740_v3 = vsel %vm1739_vm6, 1.0, %v3907_v2 }
0x132d   :  { %v1742_v49 = vmul.f32 0.3275911, %v1741_v48  ;;  %v1755_v51 = vsub.f32 0.0, %v1741_v48 }
0x132f   :  { %v1743_v50 = vadd.f32 1.0, %v1742_v49  ;;  %v1756_v53 = vmul.f32 %v1755_v51, %v1741_v48  ;;  %v1876_v48 = vld [vmem:[%s4769_s16 + $0x70] sm:$0xff] }
0x1330   :  { %v3345_v49 = vpack.c.bf16 %v1876_v48, %v1874_v45 }
0x1331   :  { %3467 = vrcp.f32 %v1743_v50  ;;  %v1757_v56 = vmul.f32 1.442695, %v1756_v53  ;;  %v1855_v53 = vrot.slane %v1657_v9, %v4306_v39 }
0x1333   :  { %3469 = vpow2.f32 %v1757_v56 }
0x133b   :  { %v3468_v52 = vpop.eup %3467 }
0x133c   :  { %v1746_v54 = vmul.f32 1.0614054, %v3468_v52 }
0x133d   :  { %v3470_v63 = vpop.eup %3469 }
0x133e   :  { %v1747_v55 = vadd.f32 -1.4531521, %v1746_v54 }
0x1340   :  { %v1748_v57 = vmul.f32 %v3468_v52, %v1747_v55  ;;  %v1860_v55 = vrot.slane %v1657_v9, %v4416_v27 }
0x1342   :  { %v1749_v58 = vadd.f32 1.4214138, %v1748_v57 }
0x1344   :  { %v1750_v34 = vmul.f32 %v3468_v52, %v1749_v58 }
0x1346   :  { %v1751_v59 = vadd.f32 -0.28449672, %v1750_v34  ;;  %v1878_v34 = vld [vmem:[#allocation23] sm:$0x3] }
0x1348   :  { %v1752_v60 = vmul.f32 %v3468_v52, %v1751_v59  ;;  %v1892_v59 = vrot.slane %v1878_v34, %v4303_v37 }
0x134a   :  { %v1753_v61 = vadd.f32 0.2548296, %v1752_v60 }
0x134c   :  { %v1754_v62 = vmul.f32 %v3468_v52, %v1753_v61 }
0x134e   :  { %v1759_v0 = vmul.f32 %v3470_v63, %v1754_v62  ;;  %v1896_v63 = vrot.slane %v1878_v34, %v4306_v39 }
0x1350   :  { %v1760_v1 = vsub.f32 1.0, %v1759_v0 }
0x1352   :  { %v1761_v4 = vmul.f32 %v1760_v1, %v1740_v3 }
0x1354   :  { %v1762_v6 = vadd.f32 1.0, %v1761_v4 }
0x1356   :  { %v1763_v7 = vmul.f32 %v1762_v6, %v1737_v5 }
0x1358   :  { %3099 = vmatmul.mubr.f32.vlgmr.msra.gmra.mrb[14].mxu0 %v1763_v7 }
0x1359   :  { %3119 = vmatprep.mubr.msk.f32.mxu0 %vm3902_vm1, %v3901_v20 }
0x142b   :  { %v1834_v11 = vpop.f32.mrb[14].mxu0 }
0x142c   :  { %v1835_v12 = vadd.f32 %v1834_v11, %v1767_v10  ;;  %v3100_v14 = vpop.f32.mrb[15].mxu0 }
0x142d   :  { %v1880_v14 = vld [vmem:[#allocation25 + $0x8] sm:$0xff] }
0x142e   :  { %v1838_v36 = vadd.f32 %v1835_v12, %v4493_v13  ;;  %v1862_v13 = vld [vmem:[%s4769_s16] sm:$0xff]  ;;  %v1879_v12 = vld [vmem:[#allocation25] sm:$0xff] }
0x142f   :  { %v3333_v25 = vpack.c.bf16 %v1864_v24, %v1862_v13 }
0x1430   :  { %v1839_v15 = vsel %vm281_vm0, %v1838_v36, 0.0 }
0x1431   :  { %1840 = vadd.xlane.f32.xlu0 %v1839_v15  ;;  %3334 = vmatpush1.bf16.msra.mxu1 %v3333_v25  ;;  %v3348_v15 = vpack.c.bf16 %v1880_v14, %v1879_v12 }
0x1432   :  { %3336 = vmatprep.subr.bf16.mxu1 %v3335_v29 }
0x1433   :  { %3349 = vmatpush3.bf16.msra.mxu0 %v3348_v15 }
0x1434   :  { %3350 = vmatprep.subr.bf16.mxu0 %v3906_v8 }
0x1435   :  { %3338 = vmatpush1.bf16.msra.mxu1 %v3337_v32 }
0x1436   :  { %3340 = vmatprep.subr.bf16.mxu1 %v3339_v40  ;;  %v1884_v40 = vld [vmem:[#allocation25 + $0x28] sm:$0xff] }
0x1437   :  { %v3354_v42 = vpack.c.bf16 %v1884_v40, %v1883_v38  ;;  %v2495_v38 = vld [vmem:[%s4775_s22 + $0x50] sm:$0xff]  ;;  %v2496_v40 = vld [vmem:[%s4775_s22 + $0x58] sm:$0xff] }
0x1439   :  { %3342 = vmatpush1.bf16.msra.mxu1 %v3341_v43  ;;  %v1886_v43 = vld [vmem:[#allocation25 + $0x38] sm:$0xff] }
0x143a   :  { %3344 = vmatprep.subr.bf16.mxu1 %v3343_v47  ;;  %v3357_v33 = vpack.c.bf16 %v1886_v43, %v1885_v41  ;;  %v3387_v41 = vpack.c.bf16 %v2496_v40, %v2495_v38  ;;  %v2498_v43 = vld [vmem:[%s4775_s22 + $0x68] sm:$0xff] }
0x143d   :  { %3346 = vmatpush1.bf16.msra.mxu1 %v3345_v49 }
0x143e   :  { %3101 = vmatprep.subr.mxu1 %v3901_v20 }
0x14be   :  { %v1841_v46 = vpop.xlane.xlu0 %1840 }
0x14bf   :  { %v1842_v16 = vmul.f32 0.015625, %v1841_v46  ;;  %v1882_v46 = vld [vmem:[#allocation25 + $0x18] sm:$0xff] }
0x14c1   :  { %v1843_v17 = vsub.f32 %v1838_v36, %v1842_v16  ;;  %v1881_v36 = vld [vmem:[#allocation25 + $0x10] sm:$0xff] }
0x14c2   :  { %v3351_v16 = vpack.c.bf16 %v1882_v46, %v1881_v36 }
0x14c3   :  { %v1844_v18 = vmul.f32 %v1843_v17, %v1843_v17 }
0x14c4   :  { %3352 = vmatpush3.bf16.msra.mxu0 %v3351_v16 }
0x14c5   :  { %v1845_v19 = vsel %vm281_vm0, %v1844_v18, 0.0  ;;  %3353 = vmatprep.subr.bf16.mxu0 %v3906_v8 }
0x14c6   :  { %1846 = vadd.xlane.f32.xlu0 %v1845_v19 }
0x1553   :  { %v1847_v50 = vpop.xlane.xlu0 %1846 }
0x1554   :  { %v1848_v51 = vmul.f32 0.015625, %v1847_v50  ;;  %v1887_v50 = vld [vmem:[%s4772_s19] sm:$0x7] }
0x1555   :  { %v2469_v14 = vrot.slane %v1887_v50, %v4306_v39  ;;  %v2474_v15 = vrot.slane %v1887_v50, %v4416_v27 }
0x1556   :  { %v1849_v52 = vadd.f32 1e-12, %v1848_v51  ;;  %v1976_v51 = vrot.slane %v1887_v50, %v4303_v37 }
0x1558   :  { %3471 = vrsqrt.f32 %v1849_v52 }
0x1562   :  { %v3472_v54 = vpop.eup %3471 }
0x1563   :  { %v1851_v56 = vmul.f32 %v3472_v54, %v1843_v17 }
0x1565   :  { %v1856_v57 = vmul.f32 %v1855_v53, %v1851_v56 }
0x1567   :  { %v4612_v58 = vadd.f32 %v1860_v55, %v1856_v57 }
0x1569   :  { %2753 = vmatmul.mubr.msk.f32.vlgmr.msra.gmra.mrb[14].mxu1 %vm281_vm0, %v4612_v58  ;;  %v1977_v52 = vadd.f32 %v1976_v51, %v4612_v58  ;;  %v2478_v58 = vld [vmem:[#allocation26 + $0x10] sm:$0xff] }
0x156a   :  { %3103 = vmatprep.mubr.msk.f32.mxu1 %vm3902_vm1, %v3901_v20 }
0x163c   :  { %v1968_v60 = vpop.f32.mrb[14].mxu1 }
0x163d   :  { %v1969_v61 = vadd.f32 %v1968_v60, %v1892_v59  ;;  %v1970_v62 = vpop.f32.mrb[15].mxu1 }
0x163e   :  { %v1971_v1 = vadd.f32 %v1970_v62, %v1896_v63  ;;  %v2477_v62 = vld [vmem:[#allocation26 + $0x8] sm:$0xff] }
0x163f   :  { %1979 = vrot.lane.b32.xlu0 %v1969_v61, %s3904_s23 }
0x1643   :  { %2215 = vrot.lane.b32.xlu0 %v1969_v61, %s3905_s5 }
0x16b1   :  { %v1980_v0 = vpop.permute.xlu0 %1979 }
0x16b2   :  { %3102 = vmatpush3.xpose.msk.msra.mxu1 %vm425_vm2, %v1980_v0  ;;  %v2479_v0 = vld [vmem:[#allocation26 + $0x18] sm:$0xff] }
0x16b3   :  { %3106 = vmatprep.subr.mxu1 %v3901_v20 }
0x16b5   :  { %3104 = vmatmul.mubr.msk.f32.vlgmr.msra.gmra.mrb[16].mxu1 %vm425_vm2, %v1969_v61  ;;  %v2216_v21 = vpop.permute.xlu0 %2215 }
0x16b6   :  { %3107 = vmatpush3.msra.mxu1 %v1971_v1  ;;  %3108 = vmatprep.mubr.msk.f32.mxu1 %vm3902_vm1, %v3901_v20 }
0x16b7   :  { %3122 = vmatprep.subr.mxu1 %v3901_v20 }
0x1788   :  { %v2051_v3 = vpop.f32.mrb[16].mxu1 }
0x1789   :  { %v3105_v4 = vpop.f32.mrb[17].mxu1  ;;  %v2055_v5 = vsel %vm500_vm3, %v2051_v3, -inf }
0x178a   :  { %2056 = vmax.xlane.f32.xlu1 %v2055_v5  ;;  %v2481_v4 = vld [vmem:[#allocation26 + $0x28] sm:$0xff] }
0x1817   :  { %v2057_v6 = vpop.xlane.xlu1 %2056 }
0x1818   :  { %v2058_v7 = vsub.f32 %v2051_v3, %v2057_v6  ;;  %v2480_v3 = vld [vmem:[#allocation26 + $0x20] sm:$0xff]  ;;  %v2482_v6 = vld [vmem:[#allocation26 + $0x30] sm:$0xff] }
0x1819   :  { %v3366_v5 = vpack.c.bf16 %v2481_v4, %v2480_v3 }
0x181a   :  { %v2059_v9 = vmul.f32 1.442695, %v2058_v7  ;;  %v2483_v7 = vld [vmem:[#allocation26 + $0x38] sm:$0xff] }
0x181c   :  { %3473 = vpow2.f32 %v2059_v9  ;;  %v3369_v9 = vpack.c.bf16 %v2483_v7, %v2482_v6 }
0x1826   :  { %v3474_v10 = vpop.eup %3473 }
0x1827   :  { %v2061_v11 = vsel %vm500_vm3, %v3474_v10, 0.0 }
0x1828   :  { %2062 = vadd.xlane.f32.xlu1 %v2061_v11 }
0x1839   :  { %2213 = vrot.lane.b32.xlu1 %v1969_v61, %s3903_s8  ;;  %v2476_v61 = vld [vmem:[#allocation26] sm:$0xff] }
0x183a   :  { %v3360_v63 = vpack.c.bf16 %v2477_v62, %v2476_v61 }
0x18b5   :  { %v2063_v17 = vpop.xlane.xlu1 %2062 }
0x18b6   :  { %3475 = vrcp.f32 %v2063_v17 }
0x18b9   :  { %v2214_v22 = vpop.permute.xlu1 %2213 }
0x18c0   :  { %v3476_v18 = vpop.eup %3475 }
0x18c1   :  { %v2065_v19 = vmul.f32 %v3476_v18, %v3474_v10  ;;  %v2485_v18 = vld [vmem:[%s4775_s22] sm:$0xff] }
0x18c3   :  { %3109 = vmatmul.mubr.msk.f32.vlgmr.msra.gmra.mrb[18].mxu1 %vm500_vm3, %v2065_v19  ;;  %v2486_v19 = vld [vmem:[%s4775_s22 + $0x8] sm:$0xff] }
0x18c4   :  { %3123 = vmatpush3.xpose.msk.msra.mxu1 %vm425_vm2, %v2216_v21  ;;  %3124 = vmatprep.mubr.msk.f32.mxu1 %vm3902_vm1, %v3901_v20  ;;  %v3372_v21 = vpack.c.bf16 %v2486_v19, %v2485_v18 }
0x18c5   :  { %3127 = vmatprep.subr.mxu1 %v3901_v20 }
0x18c7   :  { %3125 = vmatmul.mubr.msk.f32.vlgmr.msra.gmra.mrb[20].mxu1 %vm425_vm2, %v2214_v22  ;;  %v2487_v22 = vld [vmem:[%s4775_s22 + $0x10] sm:$0xff] }
0x18c8   :  { %3129 = vmatprep.mubr.msk.f32.mxu1 %vm3902_vm1, %v3901_v20 }
0x1996   :  { %v2135_v23 = vpop.f32.mrb[18].mxu1 }
0x1997   :  { %v3110_v13 = vpop.f32.mrb[19].mxu1  ;;  %3120 = vmatmul.mubr.msk.f32.vlgmr.msra.gmra.mrb[16].mxu0 %vm425_vm2, %v2135_v23  ;;  %v2488_v23 = vld [vmem:[%s4775_s22 + $0x18] sm:$0xff] }
0x1998   :  { %3140 = vmatprep.mubr.msk.f32.mxu0 %vm3902_vm1, %v3901_v20  ;;  %3355 = vmatpush3.bf16.msra.mxu0 %v3354_v42  ;;  %v3375_v13 = vpack.c.bf16 %v2488_v23, %v2487_v22  ;;  %v2497_v42 = vld [vmem:[%s4775_s22 + $0x60] sm:$0xff] }
0x1999   :  { %3356 = vmatprep.subr.bf16.mxu0 %v3906_v8 }
0x199a   :  { %v2287_v24 = vpop.f32.mrb[20].mxu1 }
0x199b   :  { %v3126_v25 = vpop.f32.mrb[21].mxu1  ;;  %v2291_v26 = vsel %vm500_vm3, %v2287_v24, -inf }
0x199c   :  { %2292 = vmax.xlane.f32.xlu0 %v2291_v26  ;;  %3358 = vmatpush3.bf16.msra.mxu0 %v3357_v33  ;;  %v2490_v25 = vld [vmem:[%s4775_s22 + $0x28] sm:$0xff]  ;;  %v3390_v33 = vpack.c.bf16 %v2498_v43, %v2497_v42 }
0x199d   :  { %3371 = vmatprep.subr.bf16.mxu0 %v3906_v8 }
0x19b2   :  { %2303 = vrot.lane.b32.xlu0 %v1971_v1, %s3903_s8  ;;  %v3363_v1 = vpack.c.bf16 %v2479_v0, %v2478_v58 }
0x1a29   :  { %v2293_v28 = vpop.xlane.xlu0 %2292 }
0x1a2a   :  { %v2294_v29 = vsub.f32 %v2287_v24, %v2293_v28  ;;  %v2489_v24 = vld [vmem:[%s4775_s22 + $0x20] sm:$0xff]  ;;  %v2491_v28 = vld [vmem:[%s4775_s22 + $0x30] sm:$0xff] }
0x1a2b   :  { %v3378_v26 = vpack.c.bf16 %v2490_v25, %v2489_v24 }
0x1a2c   :  { %v2295_v30 = vmul.f32 1.442695, %v2294_v29  ;;  %v2492_v29 = vld [vmem:[%s4775_s22 + $0x38] sm:$0xff] }
0x1a2d   :  { %v2304_v31 = vpop.permute.xlu0 %2303 }
0x1a2e   :  { %3477 = vpow2.f32 %v2295_v30  ;;  %3128 = vmatpush3.msra.mxu1 %v2304_v31  ;;  %v3381_v30 = vpack.c.bf16 %v2492_v29, %v2491_v28  ;;  %v2493_v31 = vld [vmem:[%s4775_s22 + $0x40] sm:$0xff] }
0x1a2f   :  { %3359 = vmatprep.subr.bf16.mxu1 %v3906_v8 }
0x1a38   :  { %v3478_v32 = vpop.eup %3477 }
0x1a39   :  { %v2297_v35 = vsel %vm500_vm3, %v3478_v32, 0.0 }
0x1a3a   :  { %2298 = vadd.xlane.f32.xlu1 %v2297_v35 }
0x1ac7   :  { %v2299_v44 = vpop.xlane.xlu1 %2298 }
0x1ac8   :  { %3479 = vrcp.f32 %v2299_v44  ;;  %v2499_v44 = vld [vmem:[%s4775_s22 + $0x70] sm:$0xff] }
0x1ad2   :  { %v3480_v47 = vpop.eup %3479 }
0x1ad3   :  { %v2301_v45 = vmul.f32 %v3480_v47, %v3478_v32  ;;  %v2494_v32 = vld [vmem:[%s4775_s22 + $0x48] sm:$0xff]  ;;  %v2500_v47 = vld [vmem:[%s4775_s22 + $0x78] sm:$0xff] }
0x1ad4   :  { %v3384_v35 = vpack.c.bf16 %v2494_v32, %v2493_v31 }
0x1ad5   :  { %3130 = vmatmul.mubr.msk.f32.vlgmr.msra.gmra.mrb[22].mxu1 %vm500_vm3, %v2301_v45  ;;  %v3393_v45 = vpack.c.bf16 %v2500_v47, %v2499_v44 }
0x1ad6   :  { %3159 = vmatprep.mubr.msk.f32.mxu1 %vm3902_vm1, %v3901_v20  ;;  %3361 = vmatpush3.bf16.msra.mxu1 %v3360_v63 }
0x1ad7   :  { %3362 = vmatprep.subr.bf16.mxu1 %v3906_v8 }
0x1ada   :  { %3364 = vmatpush3.bf16.msra.mxu1 %v3363_v1 }
0x1adb   :  { %3365 = vmatprep.subr.bf16.mxu1 %v3906_v8 }
0x1ade   :  { %3367 = vmatpush3.bf16.msra.mxu1 %v3366_v5 }
0x1adf   :  { %3368 = vmatprep.subr.bf16.mxu1 %v3906_v8 }
0x1ae2   :  { %3370 = vmatpush3.bf16.msra.mxu1 %v3369_v9 }
0x1ba8   :  { %v2375_v48 = vpop.f32.mrb[22].mxu1 }
0x1ba9   :  { %v3131_v49 = vpop.f32.mrb[23].mxu1  ;;  %3141 = vmatmul.mubr.msk.f32.vlgmr.msra.gmra.mrb[16].mxu0 %vm425_vm2, %v2375_v48  ;;  %v2762_v48 = vld [vmem:[%s4811_s2] ss:$0 sm:$0xff] }
0x1baa   :  { %3194 = vmatprep.mubr.msk.f32.mxu0 %vm3902_vm1, %v3901_v20  ;;  %3373 = vmatpush3.bf16.msra.mxu0 %v3372_v21 }
0x1bab   :  { %3374 = vmatprep.subr.bf16.mxu0 %v3906_v8 }
0x1bae   :  { %3376 = vmatpush3.bf16.msra.mxu0 %v3375_v13 }
0x1baf   :  { %3377 = vmatprep.subr.bf16.mxu0 %v3906_v8 }
0x1bb2   :  { %3379 = vmatpush3.bf16.msra.mxu0 %v3378_v26 }
0x1bb3   :  { %3380 = vmatprep.subr.bf16.mxu0 %v3906_v8 }
0x1bb6   :  { %3382 = vmatpush3.bf16.msra.mxu0 %v3381_v30 }
0x1bb7   :  { %3383 = vmatprep.subr.bf16.mxu0 %v3906_v8 }
0x1bba   :  { %3385 = vmatpush3.bf16.msra.mxu0 %v3384_v35 }
0x1bbb   :  { %3386 = vmatprep.subr.bf16.mxu0 %v3906_v8 }
0x1bbe   :  { %3388 = vmatpush3.bf16.msra.mxu0 %v3387_v41 }
0x1bbf   :  { %3389 = vmatprep.subr.bf16.mxu0 %v3906_v8 }
0x1bc2   :  { %3391 = vmatpush3.bf16.msra.mxu0 %v3390_v33 }
0x1bc3   :  { %3392 = vmatprep.subr.bf16.mxu0 %v3906_v8 }
0x1bc6   :  { %3394 = vmatpush3.bf16.msra.mxu0 %v3393_v45 }
0x1c7c   :  { %v2448_v53 = vpop.f32.mrb[16].mxu0 }
0x1c7d   :  { %v3397_v54 = vadd.f32 %v2448_v53, %v1977_v52  ;;  %v3142_v55 = vpop.f32.mrb[17].mxu0 }
0x1c7f   :  { %v2453_v56 = vsel %vm281_vm0, %v3397_v54, 0.0 }
0x1c80   :  { %2454 = vadd.xlane.f32.xlu1 %v2453_v56 }
0x1d0d   :  { %v2455_v57 = vpop.xlane.xlu1 %2454 }
0x1d0e   :  { %v2456_v34 = vmul.f32 0.015625, %v2455_v57 }
0x1d10   :  { %v2457_v59 = vsub.f32 %v3397_v54, %v2456_v34 }
0x1d12   :  { %v2458_v60 = vmul.f32 %v2457_v59, %v2457_v59 }
0x1d14   :  { %v2459_v20 = vsel %vm281_vm0, %v2458_v60, 0.0 }
0x1d15   :  { %2460 = vadd.xlane.f32.xlu0 %v2459_v20 }
0x1da2   :  { %v2461_v10 = vpop.xlane.xlu0 %2460 }
0x1da3   :  { %v2462_v11 = vmul.f32 0.015625, %v2461_v10 }
0x1da5   :  { %v2463_v12 = vadd.f32 1e-12, %v2462_v11 }
0x1da7   :  { %3481 = vrsqrt.f32 %v2463_v12  ;;  %v2501_v12 = vld [vmem:[%s4812_s30] sm:$0x7] }
0x1da8   :  { %v2704_v28 = vrot.slane %v2501_v12, %v4416_v27 }
0x1db1   :  { %v3482_v36 = vpop.eup %3481 }
0x1db2   :  { %v2465_v46 = vmul.f32 %v3482_v36, %v2457_v59 }
0x1db4   :  { %v2470_v16 = vmul.f32 %v2469_v14, %v2465_v46  ;;  %v2611_v14 = vrot.slane %v2501_v12, %v4303_v37  ;;  %v2699_v37 = vrot.slane %v2501_v12, %v4306_v39 }
0x1db6   :  { %v4668_v17 = vadd.f32 %v2474_v15, %v2470_v16 }
0x1db8   :  { %3160 = vmatmul.mubr.msk.f32.vlgmr.msra.gmra.mrb[24].mxu1 %vm281_vm0, %v4668_v17 }
0x1e8b   :  { %v2577_v49 = vpop.f32.mrb[24].mxu1 }
0x1e8c   :  { %v2578_v50 = vadd.f32 %v2762_v48, %v2577_v49  ;;  %v3161_v51 = vpop.f32.mrb[25].mxu1 }
0x1e8e   :  { %v2582_v52 = vmul.f32 0.70710677, %v2578_v50  ;;  %v2581_v9 = vmul.f32 0.5, %v2578_v50 }
0x1e90   :  { %v2585_v53 = vand.u32 2147483647, %v2582_v52  ;;  %vm2583_vm7 = vcmp.ge.f32.partialorder %v2582_v52, 0.0 }
0x1e91   :  { %v2584_v6 = vsel %vm2583_vm7, 1.0, %v3907_v2 }
0x1e92   :  { %v2586_v8 = vmul.f32 0.3275911, %v2585_v53  ;;  %v2599_v55 = vsub.f32 0.0, %v2585_v53 }
0x1e94   :  { %v2587_v54 = vadd.f32 1.0, %v2586_v8  ;;  %v2600_v57 = vmul.f32 %v2599_v55, %v2585_v53 }
0x1e96   :  { %3483 = vrcp.f32 %v2587_v54  ;;  %v2601_v60 = vmul.f32 1.442695, %v2600_v57 }
0x1e98   :  { %3485 = vpow2.f32 %v2601_v60 }
0x1ea0   :  { %v3484_v56 = vpop.eup %3483 }
0x1ea1   :  { %v2590_v34 = vmul.f32 1.0614054, %v3484_v56 }
0x1ea2   :  { %v3486_v3 = vpop.eup %3485 }
0x1ea3   :  { %v2591_v59 = vadd.f32 -1.4531521, %v2590_v34 }
0x1ea5   :  { %v2592_v20 = vmul.f32 %v3484_v56, %v2591_v59 }
0x1ea7   :  { %v2593_v61 = vadd.f32 1.4214138, %v2592_v20 }
0x1ea9   :  { %v2594_v62 = vmul.f32 %v3484_v56, %v2593_v61 }
0x1eab   :  { %v2595_v63 = vadd.f32 -0.28449672, %v2594_v62 }
0x1ead   :  { %v2596_v58 = vmul.f32 %v3484_v56, %v2595_v63 }
0x1eaf   :  { %v2597_v0 = vadd.f32 0.2548296, %v2596_v58 }
0x1eb1   :  { %v2598_v1 = vmul.f32 %v3484_v56, %v2597_v0 }
0x1eb3   :  { %v2603_v4 = vmul.f32 %v3486_v3, %v2598_v1 }
0x1eb5   :  { %v2604_v5 = vsub.f32 1.0, %v2603_v4 }
0x1eb7   :  { %v2605_v7 = vmul.f32 %v2604_v5, %v2584_v6 }
0x1eb9   :  { %v2606_v10 = vadd.f32 1.0, %v2605_v7 }
0x1ebb   :  { %v2607_v11 = vmul.f32 %v2606_v10, %v2581_v9 }
0x1ebd   :  { %3195 = vmatmul.mubr.f32.vlgmr.msra.gmra.mrb[18].mxu0 %v2607_v11 }
0x1f90   :  { %v2678_v36 = vpop.f32.mrb[18].mxu0 }
0x1f91   :  { %v2679_v15 = vadd.f32 %v2678_v36, %v2611_v14  ;;  %v3196_v46 = vpop.f32.mrb[19].mxu0 }
0x1f93   :  { %v2682_v16 = vadd.f32 %v2679_v15, %v4668_v17 }
0x1f95   :  { %v2683_v18 = vsel %vm281_vm0, %v2682_v16, 0.0 }
0x1f96   :  { %2684 = vadd.xlane.f32.xlu1 %v2683_v18 }
0x2023   :  { %v2685_v2 = vpop.xlane.xlu1 %2684 }
0x2024   :  { %v2686_v19 = vmul.f32 0.015625, %v2685_v2 }
0x2026   :  { %v2687_v21 = vsub.f32 %v2682_v16, %v2686_v19 }
0x2028   :  { %v2688_v22 = vmul.f32 %v2687_v21, %v2687_v21 }
0x202a   :  { %v2689_v23 = vsel %vm281_vm0, %v2688_v22, 0.0 }
0x202b   :  { %2690 = vadd.xlane.f32.xlu1 %v2689_v23 }
0x20b8   :  { %v2691_v13 = vpop.xlane.xlu1 %2690 }
0x20b9   :  { %v2692_v24 = vmul.f32 0.015625, %v2691_v13 }
0x20bb   :  { %v2693_v25 = vadd.f32 1e-12, %v2692_v24 }
0x20bd   :  { %3487 = vrsqrt.f32 %v2693_v25 }
0x20c7   :  { %v3488_v26 = vpop.eup %3487 }
0x20c8   :  { %v2695_v17 = vmul.f32 %v3488_v26, %v2687_v21 }
0x20ca   :  { %v2700_v29 = vmul.f32 %v2699_v37, %v2695_v17 }
0x20cc   :  { %v2705_v30 = vadd.f32 %v2704_v28, %v2700_v29 }
0x20ce   :  { %2706 = vst.msk [vmem:[#allocation28] sm:$0xff] %vm281_vm0, %v2705_v30 }
0x20cf   :  { %3852 = shalt.err (!%p3849_p6)
}
0x20d0   :  { %s4813_s11 = sld [smem:[#allocation50_spill]] }
0x20d6   :  { %s3853_s10 = scalar_lea.hbm %s4813_s11, 128 }
0x20d7   :  { %p3854_p7 = scmp.ne.s32.totalorder %s4813_s11, %s3853_s10  ;;  %p3857_p8 = scmp.lt.u32.totalorder %s3853_s10, %s4813_s11 }
0x20d9   :  { %p3859_p9 = pnand %p3857_p8, %p3854_p7 }
0x20db   :  { %3862 = shalt.err (!%p3859_p9)
}
0x20dc   :  { %2716 = dma.vmem_to_hbm [thread:$0]  %s2714_s0, 128, %s4813_s11, [#allocation4]  }
0x20dd   :  { %3881 = dma.done.wait [#allocation4], 128  }
0x20de   :  { %3882 = vsyncadd [#allocation4], 4294967168 }
0x20df   :  { %2720 = vsyncpa [#allocation3], 1 }
0x20e0   :  { %2721 = vsyncpa [#allocation6], 1 }
0x20e1   :  { %2722 = vsyncpa [#allocation9], 1 }
0x20e2   :  { %2723 = vsyncpa [#allocation12], 1 }
0x20e3   :  { %2724 = vsyncpa [#allocation15], 1 }
0x20e4   :  { %2725 = vsyncpa [#allocation18], 1 }
0x20e5   :  { %2726 = vsyncpa [#allocation21], 1 }
0x20e6   :  { %2727 = vsyncpa [#allocation24], 1 }
0x20e7   :  { %2728 = vsyncpa [#allocation27], 1 }
0x20e8   :  { %2729 = vsyncpa [#allocation4], 1 }

</bundles_post_ra>
